<compile_context>
chip_gen: v7x
topology: tpu7x:2x2x1
jax: 0.10.0
libtpu: 0.0.40
codegen_flags: <defaults>
</compile_context>

<pallas_src>
import jax
import jax.numpy as jnp
from jax.experimental import pallas as pl
from jax.experimental.pallas import tpu as pltpu


def _make_attention_kernel(num_heads: int, head_dim: int, block_batch: int,
                           seq_len: int):
    H = num_heads
    D = head_dim
    BB = block_batch
    N = seq_len
    C = H * D
    rows = BB * N

    def kernel(x_ref, wqkv_ref, wp_ref, bias_ref, o_ref, oh_ref):
        # x_ref    : (rows, C)   bf16  -- BB fused batch elements
        # wqkv_ref : (C, 3C)     bf16  -- fused qkv.weight.T, scale folded into q cols
        # wp_ref   : (C, C)      bf16  -- proj.weight.T
        # bias_ref : (1, C)      f32   -- proj.bias
        # o_ref    : (rows, C)   output dtype
        # oh_ref   : (rows, C)   bf16 scratch, per-head outputs in head order
        x = x_ref[...]

        # Fused qkv projection: one lane-dense (rows, 3C) MXU matmul,
        # f32 accumulate, then a single cast to bf16 for the attention core.
        qkv = jnp.dot(x, wqkv_ref[...],
                      preferred_element_type=jnp.float32).astype(jnp.bfloat16)

        # Static head loop (H is a compile-time constant): static lane slices,
        # no in-kernel transposes, batched einsums over the fused-batch dim.
        for h in range(H):
            qh = qkv[:, h * D:(h + 1) * D].reshape(BB, N, D)
            kh = qkv[:, C + h * D:C + (h + 1) * D].reshape(BB, N, D)
            vh = qkv[:, 2 * C + h * D:2 * C + (h + 1) * D].reshape(BB, N, D)

            # Scores (scale already folded into Wq wrapper-side).
            s = jnp.einsum('bqd,bkd->bqk', qh, kh,
                           preferred_element_type=jnp.float32)     # (BB, N, N)

            # Numerically stable softmax; EUP approx reciprocal for the denom.
            s = s - jnp.max(s, axis=-1, keepdims=True)
            p = jnp.exp(s)
            p = p * pl.reciprocal(jnp.sum(p, axis=-1, keepdims=True),
                                  approx=True)

            oh = jnp.einsum('bqk,bkd->bqd', p.astype(jnp.bfloat16), vh,
                            preferred_element_type=jnp.float32)    # (BB, N, D)

            # Concatenate heads by writing into the head's lane slice.
            oh_ref[:, h * D:(h + 1) * D] = (
                oh.reshape(rows, D).astype(jnp.bfloat16))

        # Single deep-K output projection + bias; output written once.
        out = jnp.dot(oh_ref[...], wp_ref[...],
                      preferred_element_type=jnp.float32) + bias_ref[...]
        o_ref[...] = out.astype(o_ref.dtype)

    return kernel


def _pick_block_batch(batch: int, seq_len: int, target_rows: int = 512) -> int:
    """Largest divisor of `batch` keeping rows = BB*N near target_rows while
    preserving >= 2 batch blocks (so v7x's 2 TensorCores both get work)."""
    best = 1
    for bb in range(1, batch + 1):
        if batch % bb != 0:
            continue
        if bb * seq_len > max(target_rows, seq_len):
            continue
        if batch >= 2 and batch // bb < 2:
            continue
        best = bb
    return best


def _vmem_cap_bytes() -> int:
    """~75% of physical VMEM (per-generation), 48 MiB fallback."""
    try:
        cap = int(pltpu.get_tpu_info().vmem_capacity_bytes)
        return max(16 * 1024 * 1024, (cap * 3) // 4)
    except Exception:
        return 48 * 1024 * 1024


def attention_pallas(x, wqkv_t, wproj_t, bproj, num_heads):
    """Attention forward.

    x       : (B, N, C) float32
    wqkv_t  : (C, 3C)  == qkv.weight.T  (qkv_bias=False, module default)
    wproj_t : (C, C)   == proj.weight.T
    bproj   : (C,)     == proj.bias
    """
    B, N, C = x.shape
    assert C % num_heads == 0, "dim must be divisible by num_heads"
    H = num_heads
    D = C // H
    BB = _pick_block_batch(B, N)
    nb = B // BB
    rows = BB * N
    scale = D ** -0.5

    # Fold the softmax scale into the q columns of the fused qkv weight
    # (free: no per-score or per-q VALU multiply inside the kernel).
    wqkv_scaled = jnp.concatenate(
        [wqkv_t[:, :C] * scale, wqkv_t[:, C:]], axis=1).astype(jnp.bfloat16)
    # TODO(synk): qkv_bias=True would need a (1, 3C) bias added to the fused qkv matmul.
    wp_b = wproj_t.astype(jnp.bfloat16)
    bias2d = bproj.reshape(1, C).astype(jnp.float32)

    # Fuse BB batch elements into one row block (wrapper-side reshape is free).
    x_b = x.astype(jnp.bfloat16).reshape(nb, rows, C)

    kernel = _make_attention_kernel(H, D, BB, N)

    out_bytes = jnp.dtype(x.dtype).itemsize
    # VMEM budget: pipelined blocks + resident weights + in-kernel temporaries.
    block_bytes = (
        2 * rows * C * 2                     # x block, bf16, double-buffered
        + 2 * rows * C * out_bytes           # output block, double-buffered
        + 2 * (C * 3 * C + C * C) * 2        # Wqkv + Wproj, bf16 (worst-case 2x)
        + 2 * C * 4                          # bias
        + rows * C * 2                       # per-head output scratch (bf16)
        + rows * 3 * C * (4 + 2)             # qkv f32 result + bf16 copy
        + BB * N * N * (4 + 2)               # scores f32 + probs bf16
        + 3 * BB * N * D * 2                 # per-head q/k/v bf16 views
        + BB * N * D * 4                     # per-head o_h f32
    )
    vmem_limit = int(min(max(2 * block_bytes, 16 * 1024 * 1024),
                         _vmem_cap_bytes()))

    out = pl.pallas_call(
        kernel,
        out_shape=jax.ShapeDtypeStruct((nb, rows, C), x.dtype),
        grid_spec=pltpu.PrefetchScalarGridSpec(
            num_scalar_prefetch=0,
            grid=(nb,),
            in_specs=[
                pl.BlockSpec((None, rows, C), lambda b: (b, 0, 0)),  # x block
                pl.BlockSpec((C, 3 * C), lambda b: (0, 0)),          # Wqkv (resident)
                pl.BlockSpec((C, C), lambda b: (0, 0)),              # Wproj (resident)
                pl.BlockSpec((1, C), lambda b: (0, 0)),              # bias
            ],
            out_specs=pl.BlockSpec((None, rows, C), lambda b: (b, 0, 0)),
            scratch_shapes=[pltpu.VMEM((rows, C), jnp.bfloat16)],
        ),
        compiler_params=pltpu.CompilerParams(
            dimension_semantics=("parallel",),
            vmem_limit_bytes=vmem_limit,
        ),
    )(x_b, wqkv_scaled, wp_b, bias2d)

    return out.reshape(B, N, C)


def attention_reference(x, wqkv_t, wproj_t, bproj, num_heads):
    """Pure-JAX (f32) reference mirroring the PyTorch forward in eval mode."""
    B, N, C = x.shape
    D = C // num_heads
    qkv = jnp.einsum('bnc,cd->bnd', x, wqkv_t)                       # (B, N, 3C)
    qkv = qkv.reshape(B, N, 3, num_heads, D).transpose(2, 0, 3, 1, 4)
    q, k, v = qkv[0], qkv[1], qkv[2]                                 # (B, H, N, D)
    attn = jnp.einsum('bhqd,bhkd->bhqk', q, k) * (D ** -0.5)
    attn = jax.nn.softmax(attn, axis=-1)
    o = jnp.einsum('bhqk,bhkd->bhqd', attn, v)
    o = o.transpose(0, 2, 1, 3).reshape(B, N, C)
    return jnp.einsum('bnc,cd->bnd', o, wproj_t) + bproj


if __name__ == "__main__":
    B, N, C = 2, 16, 64
    num_heads = 8

    key = jax.random.PRNGKey(0)
    kx, kq, kp, kb = jax.random.split(key, 4)

    x = jax.random.normal(kx, (B, N, C), dtype=jnp.float32)
    # PyTorch shapes: qkv.weight (3C, C), proj.weight (C, C), proj.bias (C,);
    # stored pre-transposed so the kernel does plain x @ W.
    wqkv_t = 0.02 * jax.random.normal(kq, (C, 3 * C), dtype=jnp.float32)
    wproj_t = 0.02 * jax.random.normal(kp, (C, C), dtype=jnp.float32)
    bproj = 0.02 * jax.random.normal(kb, (C,), dtype=jnp.float32)

    out = attention_pallas(x, wqkv_t, wproj_t, bproj, num_heads)
    out = jax.block_until_ready(out)

    ref = attention_reference(x, wqkv_t, wproj_t, bproj, num_heads)
    # bf16 matmul inputs with f32 accumulation => looser tolerance than pure f32.
    assert jnp.allclose(out, ref, atol=2e-2, rtol=2e-2), "mismatch vs reference"

    print("KERNEL_OK")
</pallas_src>

<mosaic_0001>
module attributes {stable_mosaic.version = 11 : i64} {
  func.func @kernel(%arg0: i32, %arg1: memref<1x16x64xbf16, #tpu.memory_space<vmem>>, %arg2: memref<64x192xbf16, #tpu.memory_space<vmem>>, %arg3: memref<64x64xbf16, #tpu.memory_space<vmem>>, %arg4: memref<1x64xf32, #tpu.memory_space<vmem>>, %arg5: memref<1x16x64xf32, #tpu.memory_space<vmem>>, %arg6: memref<16x64xbf16, #tpu.memory_space<vmem>>) attributes {dimension_semantics = [#tpu.dimension_semantics<parallel>], iteration_bounds = array<i64: 2>, scalar_prefetch = 0 : i64, scratch_operands = 1 : i64, tpu.core_type = #tpu.core_type<tc>, window_params = [{transform_indices = @transform_0, window_bounds = array<i64: 1, 16, 64>}, {pipeline_mode = #tpu.pipeline_mode<synchronous>, transform_indices = @transform_1, window_bounds = array<i64: 64, 192>}, {pipeline_mode = #tpu.pipeline_mode<synchronous>, transform_indices = @transform_2, window_bounds = array<i64: 64, 64>}, {pipeline_mode = #tpu.pipeline_mode<synchronous>, transform_indices = @transform_3, window_bounds = array<i64: 1, 64>}, {transform_indices = @transform_4, window_bounds = array<i64: 1, 16, 64>}]} {
    %c0 = arith.constant 0 : index
    %c0_0 = arith.constant 0 : index
    %c0_1 = arith.constant 0 : index
    %0 = vector.load %arg1[%c0, %c0_0, %c0_1] : memref<1x16x64xbf16, #tpu.memory_space<vmem>>, vector<1x16x64xbf16>
    %1 = vector.shape_cast %0 : vector<1x16x64xbf16> to vector<16x64xbf16>
    %c0_2 = arith.constant 0 : index
    %c0_3 = arith.constant 0 : index
    %2 = vector.load %arg2[%c0_2, %c0_3] : memref<64x192xbf16, #tpu.memory_space<vmem>>, vector<64x192xbf16>
    %cst = arith.constant dense<0.000000e+00> : vector<16x192xf32>
    %3 = tpu.matmul %1, %2, %cst {dimension_numbers = #tpu.dot_dimension_numbers<[1], [0], [0], [1], [0, 0, 1, 1], [], []>} : vector<16x64xbf16>, vector<64x192xbf16>, vector<16x192xf32> -> vector<16x192xf32>
    %4 = arith.truncf %3 : vector<16x192xf32> to vector<16x192xbf16>
    %5 = vector.extract_strided_slice %4 {offsets = [0, 0], sizes = [16, 8], strides = [1, 1]} : vector<16x192xbf16> to vector<16x8xbf16>
    %6 = vector.shape_cast %5 : vector<16x8xbf16> to vector<1x16x8xbf16>
    %7 = vector.extract_strided_slice %4 {offsets = [0, 64], sizes = [16, 8], strides = [1, 1]} : vector<16x192xbf16> to vector<16x8xbf16>
    %8 = vector.shape_cast %7 : vector<16x8xbf16> to vector<1x16x8xbf16>
    %9 = vector.extract_strided_slice %4 {offsets = [0, 128], sizes = [16, 8], strides = [1, 1]} : vector<16x192xbf16> to vector<16x8xbf16>
    %10 = vector.shape_cast %9 : vector<16x8xbf16> to vector<1x16x8xbf16>
    "tpu.trace_start"() <{level = 10 : i32, message = "bqd,bkd->bqk"}> : () -> ()
    %cst_4 = arith.constant dense<0.000000e+00> : vector<1x16x16xf32>
    %11 = tpu.matmul %6, %8, %cst_4 {dimension_numbers = #tpu.dot_dimension_numbers<[2], [2], [1], [1], [0, 0, 0, 1, 1, 1], [0], [0]>} : vector<1x16x8xbf16>, vector<1x16x8xbf16>, vector<1x16x16xf32> -> vector<1x16x16xf32>
    "tpu.trace_stop"() : () -> ()
    %cst_5 = arith.constant dense<0xFF800000> : vector<1x16xf32>
    %12 = vector.multi_reduction <maximumf>, %11, %cst_5 [2] : vector<1x16x16xf32> to vector<1x16xf32>
    %13 = vector.shape_cast %12 : vector<1x16xf32> to vector<1x16x1xf32>
    %14 = vector.broadcast %13 : vector<1x16x1xf32> to vector<1x16x16xf32>
    %15 = arith.subf %11, %14 : vector<1x16x16xf32>
    %16 = math.exp %15 : vector<1x16x16xf32>
    %cst_6 = arith.constant dense<0.000000e+00> : vector<1x16xf32>
    %17 = vector.multi_reduction <add>, %16, %cst_6 [2] : vector<1x16x16xf32> to vector<1x16xf32>
    %18 = vector.shape_cast %17 : vector<1x16xf32> to vector<1x16x1xf32>
    %19 = tpu.reciprocal %18 {approx = true} : vector<1x16x1xf32> -> vector<1x16x1xf32>
    %20 = vector.broadcast %19 : vector<1x16x1xf32> to vector<1x16x16xf32>
    %21 = arith.mulf %16, %20 : vector<1x16x16xf32>
    %22 = arith.truncf %21 : vector<1x16x16xf32> to vector<1x16x16xbf16>
    "tpu.trace_start"() <{level = 10 : i32, message = "bqk,bkd->bqd"}> : () -> ()
    %cst_7 = arith.constant dense<0.000000e+00> : vector<1x16x8xf32>
    %23 = tpu.matmul %22, %10, %cst_7 {dimension_numbers = #tpu.dot_dimension_numbers<[2], [1], [1], [2], [0, 0, 0, 1, 1, 2], [0], [0]>} : vector<1x16x16xbf16>, vector<1x16x8xbf16>, vector<1x16x8xf32> -> vector<1x16x8xf32>
    "tpu.trace_stop"() : () -> ()
    %24 = vector.shape_cast %23 : vector<1x16x8xf32> to vector<16x8xf32>
    %25 = arith.truncf %24 : vector<16x8xf32> to vector<16x8xbf16>
    %c0_8 = arith.constant 0 : index
    %c0_9 = arith.constant 0 : index
    %26 = vector.load %arg6[%c0_8, %c0_9] : memref<16x64xbf16, #tpu.memory_space<vmem>>, vector<16x8xbf16>
    tpu.vector_store %arg6[%c0_8, %c0_9], %25 {strides = array<i32>} : memref<16x64xbf16, #tpu.memory_space<vmem>>, vector<16x8xbf16>,
    %27 = vector.extract_strided_slice %4 {offsets = [0, 8], sizes = [16, 8], strides = [1, 1]} : vector<16x192xbf16> to vector<16x8xbf16>
    %28 = vector.shape_cast %27 : vector<16x8xbf16> to vector<1x16x8xbf16>
    %29 = vector.extract_strided_slice %4 {offsets = [0, 72], sizes = [16, 8], strides = [1, 1]} : vector<16x192xbf16> to vector<16x8xbf16>
    %30 = vector.shape_cast %29 : vector<16x8xbf16> to vector<1x16x8xbf16>
    %31 = vector.extract_strided_slice %4 {offsets = [0, 136], sizes = [16, 8], strides = [1, 1]} : vector<16x192xbf16> to vector<16x8xbf16>
    %32 = vector.shape_cast %31 : vector<16x8xbf16> to vector<1x16x8xbf16>
    "tpu.trace_start"() <{level = 10 : i32, message = "bqd,bkd->bqk"}> : () -> ()
    %cst_10 = arith.constant dense<0.000000e+00> : vector<1x16x16xf32>
    %33 = tpu.matmul %28, %30, %cst_10 {dimension_numbers = #tpu.dot_dimension_numbers<[2], [2], [1], [1], [0, 0, 0, 1, 1, 1], [0], [0]>} : vector<1x16x8xbf16>, vector<1x16x8xbf16>, vector<1x16x16xf32> -> vector<1x16x16xf32>
    "tpu.trace_stop"() : () -> ()
    %cst_11 = arith.constant dense<0xFF800000> : vector<1x16xf32>
    %34 = vector.multi_reduction <maximumf>, %33, %cst_11 [2] : vector<1x16x16xf32> to vector<1x16xf32>
    %35 = vector.shape_cast %34 : vector<1x16xf32> to vector<1x16x1xf32>
    %36 = vector.broadcast %35 : vector<1x16x1xf32> to vector<1x16x16xf32>
    %37 = arith.subf %33, %36 : vector<1x16x16xf32>
    %38 = math.exp %37 : vector<1x16x16xf32>
    %cst_12 = arith.constant dense<0.000000e+00> : vector<1x16xf32>
    %39 = vector.multi_reduction <add>, %38, %cst_12 [2] : vector<1x16x16xf32> to vector<1x16xf32>
    %40 = vector.shape_cast %39 : vector<1x16xf32> to vector<1x16x1xf32>
    %41 = tpu.reciprocal %40 {approx = true} : vector<1x16x1xf32> -> vector<1x16x1xf32>
    %42 = vector.broadcast %41 : vector<1x16x1xf32> to vector<1x16x16xf32>
    %43 = arith.mulf %38, %42 : vector<1x16x16xf32>
    %44 = arith.truncf %43 : vector<1x16x16xf32> to vector<1x16x16xbf16>
    "tpu.trace_start"() <{level = 10 : i32, message = "bqk,bkd->bqd"}> : () -> ()
    %cst_13 = arith.constant dense<0.000000e+00> : vector<1x16x8xf32>
    %45 = tpu.matmul %44, %32, %cst_13 {dimension_numbers = #tpu.dot_dimension_numbers<[2], [1], [1], [2], [0, 0, 0, 1, 1, 2], [0], [0]>} : vector<1x16x16xbf16>, vector<1x16x8xbf16>, vector<1x16x8xf32> -> vector<1x16x8xf32>
    "tpu.trace_stop"() : () -> ()
    %46 = vector.shape_cast %45 : vector<1x16x8xf32> to vector<16x8xf32>
    %47 = arith.truncf %46 : vector<16x8xf32> to vector<16x8xbf16>
    %c0_14 = arith.constant 0 : index
    %c8 = arith.constant 8 : index
    %48 = vector.load %arg6[%c0_14, %c8] : memref<16x64xbf16, #tpu.memory_space<vmem>>, vector<16x8xbf16>
    tpu.vector_store %arg6[%c0_14, %c8], %47 {strides = array<i32>} : memref<16x64xbf16, #tpu.memory_space<vmem>>, vector<16x8xbf16>,
    %49 = vector.extract_strided_slice %4 {offsets = [0, 16], sizes = [16, 8], strides = [1, 1]} : vector<16x192xbf16> to vector<16x8xbf16>
    %50 = vector.shape_cast %49 : vector<16x8xbf16> to vector<1x16x8xbf16>
    %51 = vector.extract_strided_slice %4 {offsets = [0, 80], sizes = [16, 8], strides = [1, 1]} : vector<16x192xbf16> to vector<16x8xbf16>
    %52 = vector.shape_cast %51 : vector<16x8xbf16> to vector<1x16x8xbf16>
    %53 = vector.extract_strided_slice %4 {offsets = [0, 144], sizes = [16, 8], strides = [1, 1]} : vector<16x192xbf16> to vector<16x8xbf16>
    %54 = vector.shape_cast %53 : vector<16x8xbf16> to vector<1x16x8xbf16>
    "tpu.trace_start"() <{level = 10 : i32, message = "bqd,bkd->bqk"}> : () -> ()
    %cst_15 = arith.constant dense<0.000000e+00> : vector<1x16x16xf32>
    %55 = tpu.matmul %50, %52, %cst_15 {dimension_numbers = #tpu.dot_dimension_numbers<[2], [2], [1], [1], [0, 0, 0, 1, 1, 1], [0], [0]>} : vector<1x16x8xbf16>, vector<1x16x8xbf16>, vector<1x16x16xf32> -> vector<1x16x16xf32>
    "tpu.trace_stop"() : () -> ()
    %cst_16 = arith.constant dense<0xFF800000> : vector<1x16xf32>
    %56 = vector.multi_reduction <maximumf>, %55, %cst_16 [2] : vector<1x16x16xf32> to vector<1x16xf32>
    %57 = vector.shape_cast %56 : vector<1x16xf32> to vector<1x16x1xf32>
    %58 = vector.broadcast %57 : vector<1x16x1xf32> to vector<1x16x16xf32>
    %59 = arith.subf %55, %58 : vector<1x16x16xf32>
    %60 = math.exp %59 : vector<1x16x16xf32>
    %cst_17 = arith.constant dense<0.000000e+00> : vector<1x16xf32>
    %61 = vector.multi_reduction <add>, %60, %cst_17 [2] : vector<1x16x16xf32> to vector<1x16xf32>
    %62 = vector.shape_cast %61 : vector<1x16xf32> to vector<1x16x1xf32>
    %63 = tpu.reciprocal %62 {approx = true} : vector<1x16x1xf32> -> vector<1x16x1xf32>
    %64 = vector.broadcast %63 : vector<1x16x1xf32> to vector<1x16x16xf32>
    %65 = arith.mulf %60, %64 : vector<1x16x16xf32>
    %66 = arith.truncf %65 : vector<1x16x16xf32> to vector<1x16x16xbf16>
    "tpu.trace_start"() <{level = 10 : i32, message = "bqk,bkd->bqd"}> : () -> ()
    %cst_18 = arith.constant dense<0.000000e+00> : vector<1x16x8xf32>
    %67 = tpu.matmul %66, %54, %cst_18 {dimension_numbers = #tpu.dot_dimension_numbers<[2], [1], [1], [2], [0, 0, 0, 1, 1, 2], [0], [0]>} : vector<1x16x16xbf16>, vector<1x16x8xbf16>, vector<1x16x8xf32> -> vector<1x16x8xf32>
    "tpu.trace_stop"() : () -> ()
    %68 = vector.shape_cast %67 : vector<1x16x8xf32> to vector<16x8xf32>
    %69 = arith.truncf %68 : vector<16x8xf32> to vector<16x8xbf16>
    %c0_19 = arith.constant 0 : index
    %c16 = arith.constant 16 : index
    %70 = vector.load %arg6[%c0_19, %c16] : memref<16x64xbf16, #tpu.memory_space<vmem>>, vector<16x8xbf16>
    tpu.vector_store %arg6[%c0_19, %c16], %69 {strides = array<i32>} : memref<16x64xbf16, #tpu.memory_space<vmem>>, vector<16x8xbf16>,
    %71 = vector.extract_strided_slice %4 {offsets = [0, 24], sizes = [16, 8], strides = [1, 1]} : vector<16x192xbf16> to vector<16x8xbf16>
    %72 = vector.shape_cast %71 : vector<16x8xbf16> to vector<1x16x8xbf16>
    %73 = vector.extract_strided_slice %4 {offsets = [0, 88], sizes = [16, 8], strides = [1, 1]} : vector<16x192xbf16> to vector<16x8xbf16>
    %74 = vector.shape_cast %73 : vector<16x8xbf16> to vector<1x16x8xbf16>
    %75 = vector.extract_strided_slice %4 {offsets = [0, 152], sizes = [16, 8], strides = [1, 1]} : vector<16x192xbf16> to vector<16x8xbf16>
    %76 = vector.shape_cast %75 : vector<16x8xbf16> to vector<1x16x8xbf16>
    "tpu.trace_start"() <{level = 10 : i32, message = "bqd,bkd->bqk"}> : () -> ()
    %cst_20 = arith.constant dense<0.000000e+00> : vector<1x16x16xf32>
    %77 = tpu.matmul %72, %74, %cst_20 {dimension_numbers = #tpu.dot_dimension_numbers<[2], [2], [1], [1], [0, 0, 0, 1, 1, 1], [0], [0]>} : vector<1x16x8xbf16>, vector<1x16x8xbf16>, vector<1x16x16xf32> -> vector<1x16x16xf32>
    "tpu.trace_stop"() : () -> ()
    %cst_21 = arith.constant dense<0xFF800000> : vector<1x16xf32>
    %78 = vector.multi_reduction <maximumf>, %77, %cst_21 [2] : vector<1x16x16xf32> to vector<1x16xf32>
    %79 = vector.shape_cast %78 : vector<1x16xf32> to vector<1x16x1xf32>
    %80 = vector.broadcast %79 : vector<1x16x1xf32> to vector<1x16x16xf32>
    %81 = arith.subf %77, %80 : vector<1x16x16xf32>
    %82 = math.exp %81 : vector<1x16x16xf32>
    %cst_22 = arith.constant dense<0.000000e+00> : vector<1x16xf32>
    %83 = vector.multi_reduction <add>, %82, %cst_22 [2] : vector<1x16x16xf32> to vector<1x16xf32>
    %84 = vector.shape_cast %83 : vector<1x16xf32> to vector<1x16x1xf32>
    %85 = tpu.reciprocal %84 {approx = true} : vector<1x16x1xf32> -> vector<1x16x1xf32>
    %86 = vector.broadcast %85 : vector<1x16x1xf32> to vector<1x16x16xf32>
    %87 = arith.mulf %82, %86 : vector<1x16x16xf32>
    %88 = arith.truncf %87 : vector<1x16x16xf32> to vector<1x16x16xbf16>
    "tpu.trace_start"() <{level = 10 : i32, message = "bqk,bkd->bqd"}> : () -> ()
    %cst_23 = arith.constant dense<0.000000e+00> : vector<1x16x8xf32>
    %89 = tpu.matmul %88, %76, %cst_23 {dimension_numbers = #tpu.dot_dimension_numbers<[2], [1], [1], [2], [0, 0, 0, 1, 1, 2], [0], [0]>} : vector<1x16x16xbf16>, vector<1x16x8xbf16>, vector<1x16x8xf32> -> vector<1x16x8xf32>
    "tpu.trace_stop"() : () -> ()
    %90 = vector.shape_cast %89 : vector<1x16x8xf32> to vector<16x8xf32>
    %91 = arith.truncf %90 : vector<16x8xf32> to vector<16x8xbf16>
    %c0_24 = arith.constant 0 : index
    %c24 = arith.constant 24 : index
    %92 = vector.load %arg6[%c0_24, %c24] : memref<16x64xbf16, #tpu.memory_space<vmem>>, vector<16x8xbf16>
    tpu.vector_store %arg6[%c0_24, %c24], %91 {strides = array<i32>} : memref<16x64xbf16, #tpu.memory_space<vmem>>, vector<16x8xbf16>,
    %93 = vector.extract_strided_slice %4 {offsets = [0, 32], sizes = [16, 8], strides = [1, 1]} : vector<16x192xbf16> to vector<16x8xbf16>
    %94 = vector.shape_cast %93 : vector<16x8xbf16> to vector<1x16x8xbf16>
    %95 = vector.extract_strided_slice %4 {offsets = [0, 96], sizes = [16, 8], strides = [1, 1]} : vector<16x192xbf16> to vector<16x8xbf16>
    %96 = vector.shape_cast %95 : vector<16x8xbf16> to vector<1x16x8xbf16>
    %97 = vector.extract_strided_slice %4 {offsets = [0, 160], sizes = [16, 8], strides = [1, 1]} : vector<16x192xbf16> to vector<16x8xbf16>
    %98 = vector.shape_cast %97 : vector<16x8xbf16> to vector<1x16x8xbf16>
    "tpu.trace_start"() <{level = 10 : i32, message = "bqd,bkd->bqk"}> : () -> ()
    %cst_25 = arith.constant dense<0.000000e+00> : vector<1x16x16xf32>
    %99 = tpu.matmul %94, %96, %cst_25 {dimension_numbers = #tpu.dot_dimension_numbers<[2], [2], [1], [1], [0, 0, 0, 1, 1, 1], [0], [0]>} : vector<1x16x8xbf16>, vector<1x16x8xbf16>, vector<1x16x16xf32> -> vector<1x16x16xf32>
    "tpu.trace_stop"() : () -> ()
    %cst_26 = arith.constant dense<0xFF800000> : vector<1x16xf32>
    %100 = vector.multi_reduction <maximumf>, %99, %cst_26 [2] : vector<1x16x16xf32> to vector<1x16xf32>
    %101 = vector.shape_cast %100 : vector<1x16xf32> to vector<1x16x1xf32>
    %102 = vector.broadcast %101 : vector<1x16x1xf32> to vector<1x16x16xf32>
    %103 = arith.subf %99, %102 : vector<1x16x16xf32>
    %104 = math.exp %103 : vector<1x16x16xf32>
    %cst_27 = arith.constant dense<0.000000e+00> : vector<1x16xf32>
    %105 = vector.multi_reduction <add>, %104, %cst_27 [2] : vector<1x16x16xf32> to vector<1x16xf32>
    %106 = vector.shape_cast %105 : vector<1x16xf32> to vector<1x16x1xf32>
    %107 = tpu.reciprocal %106 {approx = true} : vector<1x16x1xf32> -> vector<1x16x1xf32>
    %108 = vector.broadcast %107 : vector<1x16x1xf32> to vector<1x16x16xf32>
    %109 = arith.mulf %104, %108 : vector<1x16x16xf32>
    %110 = arith.truncf %109 : vector<1x16x16xf32> to vector<1x16x16xbf16>
    "tpu.trace_start"() <{level = 10 : i32, message = "bqk,bkd->bqd"}> : () -> ()
    %cst_28 = arith.constant dense<0.000000e+00> : vector<1x16x8xf32>
    %111 = tpu.matmul %110, %98, %cst_28 {dimension_numbers = #tpu.dot_dimension_numbers<[2], [1], [1], [2], [0, 0, 0, 1, 1, 2], [0], [0]>} : vector<1x16x16xbf16>, vector<1x16x8xbf16>, vector<1x16x8xf32> -> vector<1x16x8xf32>
    "tpu.trace_stop"() : () -> ()
    %112 = vector.shape_cast %111 : vector<1x16x8xf32> to vector<16x8xf32>
    %113 = arith.truncf %112 : vector<16x8xf32> to vector<16x8xbf16>
    %c0_29 = arith.constant 0 : index
    %c32 = arith.constant 32 : index
    %114 = vector.load %arg6[%c0_29, %c32] : memref<16x64xbf16, #tpu.memory_space<vmem>>, vector<16x8xbf16>
    tpu.vector_store %arg6[%c0_29, %c32], %113 {strides = array<i32>} : memref<16x64xbf16, #tpu.memory_space<vmem>>, vector<16x8xbf16>,
    %115 = vector.extract_strided_slice %4 {offsets = [0, 40], sizes = [16, 8], strides = [1, 1]} : vector<16x192xbf16> to vector<16x8xbf16>
    %116 = vector.shape_cast %115 : vector<16x8xbf16> to vector<1x16x8xbf16>
    %117 = vector.extract_strided_slice %4 {offsets = [0, 104], sizes = [16, 8], strides = [1, 1]} : vector<16x192xbf16> to vector<16x8xbf16>
    %118 = vector.shape_cast %117 : vector<16x8xbf16> to vector<1x16x8xbf16>
    %119 = vector.extract_strided_slice %4 {offsets = [0, 168], sizes = [16, 8], strides = [1, 1]} : vector<16x192xbf16> to vector<16x8xbf16>
    %120 = vector.shape_cast %119 : vector<16x8xbf16> to vector<1x16x8xbf16>
    "tpu.trace_start"() <{level = 10 : i32, message = "bqd,bkd->bqk"}> : () -> ()
    %cst_30 = arith.constant dense<0.000000e+00> : vector<1x16x16xf32>
    %121 = tpu.matmul %116, %118, %cst_30 {dimension_numbers = #tpu.dot_dimension_numbers<[2], [2], [1], [1], [0, 0, 0, 1, 1, 1], [0], [0]>} : vector<1x16x8xbf16>, vector<1x16x8xbf16>, vector<1x16x16xf32> -> vector<1x16x16xf32>
    "tpu.trace_stop"() : () -> ()
    %cst_31 = arith.constant dense<0xFF800000> : vector<1x16xf32>
    %122 = vector.multi_reduction <maximumf>, %121, %cst_31 [2] : vector<1x16x16xf32> to vector<1x16xf32>
    %123 = vector.shape_cast %122 : vector<1x16xf32> to vector<1x16x1xf32>
    %124 = vector.broadcast %123 : vector<1x16x1xf32> to vector<1x16x16xf32>
    %125 = arith.subf %121, %124 : vector<1x16x16xf32>
    %126 = math.exp %125 : vector<1x16x16xf32>
    %cst_32 = arith.constant dense<0.000000e+00> : vector<1x16xf32>
    %127 = vector.multi_reduction <add>, %126, %cst_32 [2] : vector<1x16x16xf32> to vector<1x16xf32>
    %128 = vector.shape_cast %127 : vector<1x16xf32> to vector<1x16x1xf32>
    %129 = tpu.reciprocal %128 {approx = true} : vector<1x16x1xf32> -> vector<1x16x1xf32>
    %130 = vector.broadcast %129 : vector<1x16x1xf32> to vector<1x16x16xf32>
    %131 = arith.mulf %126, %130 : vector<1x16x16xf32>
    %132 = arith.truncf %131 : vector<1x16x16xf32> to vector<1x16x16xbf16>
    "tpu.trace_start"() <{level = 10 : i32, message = "bqk,bkd->bqd"}> : () -> ()
    %cst_33 = arith.constant dense<0.000000e+00> : vector<1x16x8xf32>
    %133 = tpu.matmul %132, %120, %cst_33 {dimension_numbers = #tpu.dot_dimension_numbers<[2], [1], [1], [2], [0, 0, 0, 1, 1, 2], [0], [0]>} : vector<1x16x16xbf16>, vector<1x16x8xbf16>, vector<1x16x8xf32> -> vector<1x16x8xf32>
    "tpu.trace_stop"() : () -> ()
    %134 = vector.shape_cast %133 : vector<1x16x8xf32> to vector<16x8xf32>
    %135 = arith.truncf %134 : vector<16x8xf32> to vector<16x8xbf16>
    %c0_34 = arith.constant 0 : index
    %c40 = arith.constant 40 : index
    %136 = vector.load %arg6[%c0_34, %c40] : memref<16x64xbf16, #tpu.memory_space<vmem>>, vector<16x8xbf16>
    tpu.vector_store %arg6[%c0_34, %c40], %135 {strides = array<i32>} : memref<16x64xbf16, #tpu.memory_space<vmem>>, vector<16x8xbf16>,
    %137 = vector.extract_strided_slice %4 {offsets = [0, 48], sizes = [16, 8], strides = [1, 1]} : vector<16x192xbf16> to vector<16x8xbf16>
    %138 = vector.shape_cast %137 : vector<16x8xbf16> to vector<1x16x8xbf16>
    %139 = vector.extract_strided_slice %4 {offsets = [0, 112], sizes = [16, 8], strides = [1, 1]} : vector<16x192xbf16> to vector<16x8xbf16>
    %140 = vector.shape_cast %139 : vector<16x8xbf16> to vector<1x16x8xbf16>
    %141 = vector.extract_strided_slice %4 {offsets = [0, 176], sizes = [16, 8], strides = [1, 1]} : vector<16x192xbf16> to vector<16x8xbf16>
    %142 = vector.shape_cast %141 : vector<16x8xbf16> to vector<1x16x8xbf16>
    "tpu.trace_start"() <{level = 10 : i32, message = "bqd,bkd->bqk"}> : () -> ()
    %cst_35 = arith.constant dense<0.000000e+00> : vector<1x16x16xf32>
    %143 = tpu.matmul %138, %140, %cst_35 {dimension_numbers = #tpu.dot_dimension_numbers<[2], [2], [1], [1], [0, 0, 0, 1, 1, 1], [0], [0]>} : vector<1x16x8xbf16>, vector<1x16x8xbf16>, vector<1x16x16xf32> -> vector<1x16x16xf32>
    "tpu.trace_stop"() : () -> ()
    %cst_36 = arith.constant dense<0xFF800000> : vector<1x16xf32>
    %144 = vector.multi_reduction <maximumf>, %143, %cst_36 [2] : vector<1x16x16xf32> to vector<1x16xf32>
    %145 = vector.shape_cast %144 : vector<1x16xf32> to vector<1x16x1xf32>
    %146 = vector.broadcast %145 : vector<1x16x1xf32> to vector<1x16x16xf32>
    %147 = arith.subf %143, %146 : vector<1x16x16xf32>
    %148 = math.exp %147 : vector<1x16x16xf32>
    %cst_37 = arith.constant dense<0.000000e+00> : vector<1x16xf32>
    %149 = vector.multi_reduction <add>, %148, %cst_37 [2] : vector<1x16x16xf32> to vector<1x16xf32>
    %150 = vector.shape_cast %149 : vector<1x16xf32> to vector<1x16x1xf32>
    %151 = tpu.reciprocal %150 {approx = true} : vector<1x16x1xf32> -> vector<1x16x1xf32>
    %152 = vector.broadcast %151 : vector<1x16x1xf32> to vector<1x16x16xf32>
    %153 = arith.mulf %148, %152 : vector<1x16x16xf32>
    %154 = arith.truncf %153 : vector<1x16x16xf32> to vector<1x16x16xbf16>
    "tpu.trace_start"() <{level = 10 : i32, message = "bqk,bkd->bqd"}> : () -> ()
    %cst_38 = arith.constant dense<0.000000e+00> : vector<1x16x8xf32>
    %155 = tpu.matmul %154, %142, %cst_38 {dimension_numbers = #tpu.dot_dimension_numbers<[2], [1], [1], [2], [0, 0, 0, 1, 1, 2], [0], [0]>} : vector<1x16x16xbf16>, vector<1x16x8xbf16>, vector<1x16x8xf32> -> vector<1x16x8xf32>
    "tpu.trace_stop"() : () -> ()
    %156 = vector.shape_cast %155 : vector<1x16x8xf32> to vector<16x8xf32>
    %157 = arith.truncf %156 : vector<16x8xf32> to vector<16x8xbf16>
    %c0_39 = arith.constant 0 : index
    %c48 = arith.constant 48 : index
    %158 = vector.load %arg6[%c0_39, %c48] : memref<16x64xbf16, #tpu.memory_space<vmem>>, vector<16x8xbf16>
    tpu.vector_store %arg6[%c0_39, %c48], %157 {strides = array<i32>} : memref<16x64xbf16, #tpu.memory_space<vmem>>, vector<16x8xbf16>,
    %159 = vector.extract_strided_slice %4 {offsets = [0, 56], sizes = [16, 8], strides = [1, 1]} : vector<16x192xbf16> to vector<16x8xbf16>
    %160 = vector.shape_cast %159 : vector<16x8xbf16> to vector<1x16x8xbf16>
    %161 = vector.extract_strided_slice %4 {offsets = [0, 120], sizes = [16, 8], strides = [1, 1]} : vector<16x192xbf16> to vector<16x8xbf16>
    %162 = vector.shape_cast %161 : vector<16x8xbf16> to vector<1x16x8xbf16>
    %163 = vector.extract_strided_slice %4 {offsets = [0, 184], sizes = [16, 8], strides = [1, 1]} : vector<16x192xbf16> to vector<16x8xbf16>
    %164 = vector.shape_cast %163 : vector<16x8xbf16> to vector<1x16x8xbf16>
    "tpu.trace_start"() <{level = 10 : i32, message = "bqd,bkd->bqk"}> : () -> ()
    %cst_40 = arith.constant dense<0.000000e+00> : vector<1x16x16xf32>
    %165 = tpu.matmul %160, %162, %cst_40 {dimension_numbers = #tpu.dot_dimension_numbers<[2], [2], [1], [1], [0, 0, 0, 1, 1, 1], [0], [0]>} : vector<1x16x8xbf16>, vector<1x16x8xbf16>, vector<1x16x16xf32> -> vector<1x16x16xf32>
    "tpu.trace_stop"() : () -> ()
    %cst_41 = arith.constant dense<0xFF800000> : vector<1x16xf32>
    %166 = vector.multi_reduction <maximumf>, %165, %cst_41 [2] : vector<1x16x16xf32> to vector<1x16xf32>
    %167 = vector.shape_cast %166 : vector<1x16xf32> to vector<1x16x1xf32>
    %168 = vector.broadcast %167 : vector<1x16x1xf32> to vector<1x16x16xf32>
    %169 = arith.subf %165, %168 : vector<1x16x16xf32>
    %170 = math.exp %169 : vector<1x16x16xf32>
    %cst_42 = arith.constant dense<0.000000e+00> : vector<1x16xf32>
    %171 = vector.multi_reduction <add>, %170, %cst_42 [2] : vector<1x16x16xf32> to vector<1x16xf32>
    %172 = vector.shape_cast %171 : vector<1x16xf32> to vector<1x16x1xf32>
    %173 = tpu.reciprocal %172 {approx = true} : vector<1x16x1xf32> -> vector<1x16x1xf32>
    %174 = vector.broadcast %173 : vector<1x16x1xf32> to vector<1x16x16xf32>
    %175 = arith.mulf %170, %174 : vector<1x16x16xf32>
    %176 = arith.truncf %175 : vector<1x16x16xf32> to vector<1x16x16xbf16>
    "tpu.trace_start"() <{level = 10 : i32, message = "bqk,bkd->bqd"}> : () -> ()
    %cst_43 = arith.constant dense<0.000000e+00> : vector<1x16x8xf32>
    %177 = tpu.matmul %176, %164, %cst_43 {dimension_numbers = #tpu.dot_dimension_numbers<[2], [1], [1], [2], [0, 0, 0, 1, 1, 2], [0], [0]>} : vector<1x16x16xbf16>, vector<1x16x8xbf16>, vector<1x16x8xf32> -> vector<1x16x8xf32>
    "tpu.trace_stop"() : () -> ()
    %178 = vector.shape_cast %177 : vector<1x16x8xf32> to vector<16x8xf32>
    %179 = arith.truncf %178 : vector<16x8xf32> to vector<16x8xbf16>
    %c0_44 = arith.constant 0 : index
    %c56 = arith.constant 56 : index
    %180 = vector.load %arg6[%c0_44, %c56] : memref<16x64xbf16, #tpu.memory_space<vmem>>, vector<16x8xbf16>
    tpu.vector_store %arg6[%c0_44, %c56], %179 {strides = array<i32>} : memref<16x64xbf16, #tpu.memory_space<vmem>>, vector<16x8xbf16>,
    %c0_45 = arith.constant 0 : index
    %c0_46 = arith.constant 0 : index
    %181 = vector.load %arg6[%c0_45, %c0_46] : memref<16x64xbf16, #tpu.memory_space<vmem>>, vector<16x64xbf16>
    %c0_47 = arith.constant 0 : index
    %c0_48 = arith.constant 0 : index
    %182 = vector.load %arg3[%c0_47, %c0_48] : memref<64x64xbf16, #tpu.memory_space<vmem>>, vector<64x64xbf16>
    %cst_49 = arith.constant dense<0.000000e+00> : vector<16x64xf32>
    %183 = tpu.matmul %181, %182, %cst_49 {dimension_numbers = #tpu.dot_dimension_numbers<[1], [0], [0], [1], [0, 0, 1, 1], [], []>} : vector<16x64xbf16>, vector<64x64xbf16>, vector<16x64xf32> -> vector<16x64xf32>
    %c0_50 = arith.constant 0 : index
    %c0_51 = arith.constant 0 : index
    %184 = vector.load %arg4[%c0_50, %c0_51] : memref<1x64xf32, #tpu.memory_space<vmem>>, vector<1x64xf32>
    %185 = vector.broadcast %184 : vector<1x64xf32> to vector<16x64xf32>
    %186 = arith.addf %183, %185 : vector<16x64xf32>
    %c0_52 = arith.constant 0 : index
    %c0_53 = arith.constant 0 : index
    %c0_54 = arith.constant 0 : index
    %187 = vector.load %arg5[%c0_52, %c0_53, %c0_54] : memref<1x16x64xf32, #tpu.memory_space<vmem>>, vector<1x16x64xf32>
    %188 = vector.shape_cast %187 : vector<1x16x64xf32> to vector<16x64xf32>
    %189 = vector.shape_cast %186 : vector<16x64xf32> to vector<1x16x64xf32>
    tpu.vector_store %arg5[%c0_52, %c0_53, %c0_54], %189 {strides = array<i32>} : memref<1x16x64xf32, #tpu.memory_space<vmem>>, vector<1x16x64xf32>,
    return
  }
  func.func @transform_0(%arg0: i32) -> (i32, i32, i32) {
    %c0_i32 = arith.constant 0 : i32
    %c0_i32_0 = arith.constant 0 : i32
    %c0_i32_1 = arith.constant 0 : i32
    return %arg0, %c0_i32, %c0_i32_0 : i32, i32, i32
  }
  func.func @transform_1(%arg0: i32) -> (i32, i32) {
    %c0_i32 = arith.constant 0 : i32
    %c0_i32_0 = arith.constant 0 : i32
    %c0_i32_1 = arith.constant 0 : i32
    return %c0_i32, %c0_i32_0 : i32, i32
  }
  func.func @transform_2(%arg0: i32) -> (i32, i32) {
    %c0_i32 = arith.constant 0 : i32
    %c0_i32_0 = arith.constant 0 : i32
    %c0_i32_1 = arith.constant 0 : i32
    return %c0_i32, %c0_i32_0 : i32, i32
  }
  func.func @transform_3(%arg0: i32) -> (i32, i32) {
    %c0_i32 = arith.constant 0 : i32
    %c0_i32_0 = arith.constant 0 : i32
    %c0_i32_1 = arith.constant 0 : i32
    return %c0_i32, %c0_i32_0 : i32, i32
  }
  func.func @transform_4(%arg0: i32) -> (i32, i32, i32) {
    %c0_i32 = arith.constant 0 : i32
    %c0_i32_0 = arith.constant 0 : i32
    %c0_i32_1 = arith.constant 0 : i32
    return %arg0, %c0_i32, %c0_i32_0 : i32, i32, i32
  }
}

</mosaic_0001>

<bundles_post_ra>
// kernel: tpu_custom_call.1
= control target key start
LH: loop header
LB: loop body
LE: loop exit
PB: predicated region body
PF: predicated region fallthrough
CT: control target
= control target key end

     0   :  { %9 = vsyncpa [#allocation4], 0  ;;  %s2642_s0 = inlined_call_operand.hbm [shape: bf16[2,16,64], index: 0, kind: input, shape index: {}]   ;;  %s2643_s1 = inlined_call_operand.hbm [shape: bf16[64,192], index: 1, kind: input, shape index: {}]   ;;  %s2644_s2 = inlined_call_operand.hbm [shape: bf16[64,64], index: 2, kind: input, shape index: {}]   ;;  %s2645_s3 = inlined_call_operand.vmem [shape: f32[1,64], index: 3, kind: input, shape index: {}]   ;;  %s2646_s4 = inlined_call_operand.hbm [shape: f32[2,16,64], index: 4, kind: output, shape index: {}]  }
   0x1   :  { %11 = vsyncpa [#allocation4 + $0x1], 0 }
   0x2   :  { %12 = vsyncpa [#allocation7], 0 }
   0x3   :  { %13 = vsyncpa [#allocation5], 0 }
   0x4   :  { %15 = vsyncpa [#allocation5 + $0x1], 0  ;;  %s2138_s15 = smov 0   ;;  %s2140_s16 = smov 0  }
   0x5   :  { %s2142_s17 = smov 0   ;;  %s2144_s18 = smov 0  }
   0x6 LB: > { %s2159_s19 = sadd.s32 4294967295, %s2084_s18   ;;  %s1560_s20 = sadd.s32 4294967294, %s2084_s18   ;;  %s2084_s18 = sphi %s2144_s18, %s2666_s18   ;;  %s2080_s17 = sphi %s2142_s17, %s2665_s17   ;;  %s2076_s16 = sphi %s2140_s16, %s2664_s16   ;;  %s2072_s15 = sphi %s2138_s15, %s2663_s15  }
   0x7   : > { %p41_p0 = scmp.ne.s32.totalorder %s2076_s16, %s2072_s15  ;;  %p2647_p1 = scmp.eq.s32.totalorder %s2159_s19, 0 }
   0x8   : > { %p134_p3 = scmp.eq.s32.totalorder %s1560_s20, 1  ;;  %p1561_p5 = scmp.ge.s32.totalorder %s2084_s18, 1 }
   0x9   : > { %p2168_p4 = por %p2647_p1, %p41_p0  ;;  %p141_p7 = scmp.lt.s32.totalorder %s2084_s18, 3 }
   0xa   : > { %p2173_p6 = por %p134_p3, %p41_p0  ;;  %s2086_s24 = smov [#allocation6]  }
   0xb   : > { %s2650_s21 = scalar_select %p2168_p4, 1, 0 }
   0xc   : > { %s2651_s22 = scalar_select %p2173_p6, 1, 0 }
   0xd   : > { %p2178_p8 = pnand %p1561_p5, %p141_p7  ;;  %s153_s25 = sshll.u32 %s2086_s24, 4  ;;  %s2182_s25 = int_to_ptr.vmem [resolvable:$true] %s153_s25 }
   0xe   : > { %s2087_s27 = smov [#allocation8]   ;;  %s1928_s5 = scalar_lea.hbm %s2643_s1, 1024 }
   0xf   : > { %p1769_p9 = pneg %p2178_p8  ;;  %s166_s28 = sshll.u32 %s2087_s27, 4  ;;  %s2193_s28 = int_to_ptr.vmem [resolvable:$true] %s166_s28 }
  0x10   : > { %p1929_p12 = scmp.ne.s32.totalorder %s2643_s1, %s1928_s5  ;;  %p1935_p5 = scmp.lt.u32.totalorder %s1928_s5, %s2643_s1 }
  0x11   : > { %p2189_p11 = pnand %p1769_p9, %p2647_p1 }
  0x13   : > { %p1930_p13 = pneg %p2189_p11 }
  0x15   : > { %p1931_p0 = pnand %p1930_p13, %p1929_p12 }
  0x17   : > { %p1932_p3 = pneg %p1931_p0 }
  0x19   : > { %p1937_p7 = pnand %p1935_p5, %p1932_p3 }
  0x1b   : > { %1940 = shalt.err (!%p1937_p7)
}
  0x1c   : > { %s1941_s10 = scalar_lea.vmem %s2182_s25, 1024  ;;  %p1949_p2 = scmp.lt.s32.totalorder %s2182_s25, %s2182_s25 }
  0x1d   : > { %p1942_p9 = scmp.ne.s32.totalorder %s2182_s25, %s1941_s10  ;;  %p1950_p12 = scmp.lt.s32.totalorder %s1941_s10, %s1941_s10 }
  0x1f   : > { %p1944_p10 = pnand %p1942_p9, %p1930_p13  ;;  %p1951_p0 = por %p1950_p12, %p1949_p2 }
  0x21   : > { %p1945_p1 = pneg %p1944_p10 }
  0x23   : > { %p1952_p6 = pnand %p1951_p0, %p1945_p1 }
  0x25   : > { %1955 = shalt.err (!%p1952_p6)
}
  0x26   : > { %s2088_s11 = smov 128   ;;  %s2089_s12 = smov 8  }
  0x27   : > { %1772 = dma.hbm_to_vmem [thread:$0]  (!%p2189_p11), %s2643_s1, 1024, %s2182_s25, [#allocation7], %s2088_s11, %s2088_s11, %s2089_s12  }
  0x28   : > { %s1956_s27 = scalar_lea.hbm %s2644_s2, 512 }
  0x29   : > { %p1957_p2 = scmp.ne.s32.totalorder %s2644_s2, %s1956_s27  ;;  %p1963_p10 = scmp.lt.u32.totalorder %s1956_s27, %s2644_s2 }
  0x2b   : > { %p1959_p1 = pnand %p1957_p2, %p1930_p13 }
  0x2d   : > { %p1960_p6 = pneg %p1959_p1 }
  0x2f   : > { %p1965_p3 = pnand %p1963_p10, %p1960_p6 }
  0x31   : > { %1968 = shalt.err (!%p1965_p3)
}
  0x32   : > { %s1969_s25 = scalar_lea.vmem %s2193_s28, 512  ;;  %p1977_p12 = scmp.lt.s32.totalorder %s2193_s28, %s2193_s28 }
  0x33   : > { %p1970_p5 = scmp.ne.s32.totalorder %s2193_s28, %s1969_s25  ;;  %p1978_p0 = scmp.lt.s32.totalorder %s1969_s25, %s1969_s25 }
  0x35   : > { %p1972_p7 = pnand %p1970_p5, %p1930_p13  ;;  %p1979_p2 = por %p1978_p0, %p1977_p12 }
  0x37   : > { %p1973_p9 = pneg %p1972_p7 }
  0x39   : > { %p1980_p1 = pnand %p1979_p2, %p1973_p9 }
  0x3b   : > { %1983 = shalt.err (!%p1980_p1)
}
  0x3c   : > { %s2090_s7 = smov 64   ;;  %s2091_s8 = smov 4  }
  0x3d   : > { %1775 = dma.hbm_to_vmem [thread:$0]  (!%p2189_p11), %s2644_s2, 512, %s2193_s28, [#allocation7], %s2090_s7, %s2090_s7, %s2091_s8  }
  0x3e   : > { %s2251_s11 = sadd.s32 1, %s2084_s18   ;;  %s28_s13 = sadd.s32 1, %s2080_s17 }
  0x3f   : > { %s25_s12 = ssub.s32 %s2084_s18, %s2251_s11  ;;  %p35_p6 = scmp.ne.s32.totalorder %s2080_s17, %s2076_s16 }
  0x40   : > { %p26_p13 = scmp.eq.s32.totalorder %s25_s12, 0  ;;  %p36_p10 = scmp.eq.s32.totalorder %s2084_s18, 0 }
  0x41   : > { %p2654_p5 = scmp.eq.s32.totalorder %s2159_s19, 1  ;;  %p1786_p9 = scmp.lt.s32.totalorder %s2084_s18, 2 }
  0x42   : > { %s2260_s14 = scalar_select %p26_p13, %s2080_s17, %s28_s13  }
  0x43   : > { %p37_p3 = por %p36_p10, %p35_p6  ;;  %p2264_p7 = por %p2654_p5, %p35_p6 }
  0x44   : > { %s183_s20 = sand.u32 1, %s2080_s17   ;;  %s1610_s28 = sshll.u32 %s2084_s18, 7 }
  0x45   : > { %s2655_s26 = scalar_select %p2264_p7, 1, 0 }
  0x46   : > { %s1565_s24 = sshll.u32 %s183_s20, 3  ;;  %s2274_s30 = scalar_lea.hbm %s2642_s0, %s1610_s28 }
  0x47   : > { %s187_s5 = scalar_lea.vmem [#allocation3], %s1565_s24  ;;  %p2278_p11 = pnand %p1786_p9, %p37_p3 }
  0x48   : > { %s194_s6 = sshll.u32 %s187_s5, 4  ;;  %s2282_s9 = scalar_lea.sflag [#allocation4], %s183_s20  ;;  %s2276_s6 = int_to_ptr.vmem [resolvable:$true] %s194_s6 }
  0x49   : > { %s1984_s10 = scalar_lea.hbm %s2274_s30, 128  ;;  %p1986_p0 = pneg %p2278_p11 }
  0x4a   : > { %p1985_p12 = scmp.ne.s32.totalorder %s2274_s30, %s1984_s10  ;;  %s1989_s24 = scalar_lea.hbm %s2642_s0, 256 }
  0x4b   : > { %p1990_p13 = scmp.lt.u32.totalorder %s2274_s30, %s2642_s0  ;;  %p1991_p6 = scmp.lt.u32.totalorder %s1989_s24, %s1984_s10 }
  0x4c   : > { %p1987_p2 = pnand %p1986_p0, %p1985_p12  ;;  %p1993_p3 = scmp.lt.u32.totalorder %s1984_s10, %s2274_s30 }
  0x4d   : > { %p1992_p10 = por %p1991_p6, %p1990_p13 }
  0x4e   : > { %p1988_p1 = pneg %p1987_p2 }
  0x4f   : > { %p1994_p5 = por %p1993_p3, %p1992_p10 }
  0x51   : > { %p1995_p9 = pnand %p1994_p5, %p1988_p1 }
  0x53   : > { %1998 = shalt.err (!%p1995_p9)
}
  0x54   : > { %s1999_s20 = scalar_lea.vmem %s2276_s6, 128  ;;  %s2092_s29 = smov [#allocation3]  }
  0x55   : > { %p2000_p12 = scmp.ne.s32.totalorder %s2276_s6, %s1999_s20  ;;  %s2004_s5 = sshll.u32 %s2092_s29, 4  ;;  %s2005_s5 = int_to_ptr.vmem [resolvable:$false] %s2004_s5 }
  0x56   : > { %s2006_s12 = scalar_lea.vmem %s2005_s5, 256  ;;  %p2007_p4 = scmp.lt.s32.totalorder %s2276_s6, %s2005_s5 }
  0x57   : > { %p2002_p2 = pnand %p2000_p12, %p1986_p0  ;;  %p2008_p13 = scmp.lt.s32.totalorder %s2006_s12, %s1999_s20 }
  0x59   : > { %p2003_p7 = pneg %p2002_p2  ;;  %p2009_p6 = por %p2008_p13, %p2007_p4 }
  0x5b   : > { %p2010_p10 = pnand %p2009_p6, %p2003_p7 }
  0x5d   : > { %2013 = shalt.err (!%p2010_p10)
}
  0x5e   : > { %1779 = dma.hbm_to_vmem [thread:$0]  (!%p2278_p11), %s2274_s30, 128, %s2276_s6, %s2282_s9, %s2090_s7, %s2090_s7, %s2091_s8  }
  0x5f   : > { %206 = sbr.rel (%p2178_p8) target bundleno = 2203 (0x89b), region = 36  ;;  %s2316_s10 = sand.u32 (!%p2178_p8), 1, %s2076_s16  }
  0x60   : > { %s1569_s13 = sshll.u32 (!%p2178_p8), %s2316_s10, 3  ;;  %s209_s24 = scalar_lea.sflag (!%p2178_p8), [#allocation4], %s2316_s10 }
  0x61   : > { %s212_s28 = scalar_lea.vmem (!%p2178_p8), [#allocation3], %s1569_s13  ;;  %p2657_p4 = scmp.ne.s32.totalorder (!%p2178_p8), %s2650_s21, 0 }
  0x66   : > { %2059 = dma.done.wait (%p2657_p4), %s209_s24, 128  }
  0x67   : > { %2061 = vsyncadd (%p2657_p4), %s209_s24, 4294967168  ;;  %p2658_p7 = scmp.eq.s32.totalorder %s2159_s19, 0 }
  0x69   : > { %2063 = dma.done.wait (%p2658_p7), [#allocation7], 1536   ;;  %p2659_p11 = pmov %p2658_p7 }
  0x6a   : > { %v2093_v0 = vmov 0   ;;  %v1847_v1 = vld [vmem:[#allocation6 + $0x4] ss:$8 sps:$4 sm:$0xff]   ;;  %v1849_v2 = vld [vmem:[#allocation6] ss:$8 sps:$4 sm:$0xff]   ;;  %v1859_v9 = vld [vmem:[%s212_s28] sm:$0xff]  }
  0x6b   : > { %2065 = vsyncadd (%p2659_p11), [#allocation7], 4294965760  ;;  %337 = vmatprep.mubr.bf16.mxu0 %v2093_v0  ;;  %305 = vmatprep.subr.bf16.mxu0 %v1847_v1  ;;  %v1850_v3 = vld [vmem:[#allocation6 + $0x14] ss:$8 sps:$4 sm:$0xff]   ;;  %v1852_v4 = vld [vmem:[#allocation6 + $0x10] ss:$8 sps:$4 sm:$0xff]  }
  0x6c   : > { %306 = vmatpush1.bf16.msra.mxu0 %v1849_v2  ;;  %v1853_v5 = vld [vmem:[#allocation6 + $0x24] ss:$8 sps:$4 sm:$0xff]   ;;  %v1855_v6 = vld [vmem:[#allocation6 + $0x20] ss:$8 sps:$4 sm:$0xff]   ;;  %v1856_v7 = vld [vmem:[#allocation6 + $0x34] ss:$8 sps:$4 sm:$0xff]  }
  0x6d   : > { %307 = vmatprep.subr.bf16.mxu0 %v1850_v3  ;;  %v1858_v8 = vld [vmem:[#allocation6 + $0x30] ss:$8 sps:$4 sm:$0xff]   ;;  %vm301_vm0 = vcmask 523264   ;;  %v2094_v10 = vmov 0.0   ;;  %vm2095_vm1 = vmmov 0   ;;  %s2096_s21 = smov 64  }
  0x6e   : > { %1649 = vmatprep.subr.bf16.mxu1 %v2094_v10  ;;  %1651 = vmatprep.mubr.msk.bf16.mxu1 %vm2095_vm1, %v2094_v10  ;;  %vm353_vm2 = vcmask 64512   ;;  %vm401_vm3 = vcmask 130048   ;;  %s2097_s23 = smov 56   ;;  %s2098_s7 = smov 112   ;;  %vm598_vm4 = vcmask 130112   ;;  %vm726_vm5 = vcmask 195712  }
  0x6f   : > { %s2099_s8 = smov 88   ;;  %s2100_s30 = smov 80   ;;  %vm854_vm6 = vcmask 261312   ;;  %vm982_vm7 = vcmask 326912   ;;  %vm1110_vm8 = vcmask 392512   ;;  %vm1238_vm9 = vcmask 458112  }
  0x70   : > { %308 = vmatpush1.bf16.msra.mxu0 %v1852_v4  ;;  %s2101_s6 = smov 72   ;;  %s2102_s25 = smov 120   ;;  %vm1366_vm10 = vcmask 523712  }
  0x71   : > { %309 = vmatprep.subr.bf16.mxu0 %v1853_v5  ;;  %s2103_s9 = smov 48   ;;  %s2104_s27 = smov 40  }
  0x72   : > { %s2105_s20 = smov 104   ;;  %s2106_s29 = smov 32  }
  0x73   : > { %s2107_s5 = smov 96   ;;  %s2108_s12 = smov 24  }
  0x74   : > { %310 = vmatpush1.bf16.msra.mxu0 %v1855_v6  ;;  %s2109_s13 = smov 16   ;;  %s2110_s24 = smov 8  }
  0x75   : > { %311 = vmatprep.subr.bf16.mxu0 %v1856_v7  ;;  %s1572_s28 = sshll.u32 %s2316_s10, 4  ;;  %p2660_p0 = scmp.ne.s32.totalorder %s2655_s26, 0 }
  0x78   : > { %312 = vmatpush1.bf16.msra.mxu0 %v1858_v8 }
  0x79   : > { %1673 = vmatprep.subr.bf16.mxu0 %v2094_v10 }
  0x7b   : > { %1582 = vmatmul.mubr.msk.bf16.vlgmr.msra.gmra.mrb[0].mxu0 %vm301_vm0, %v1859_v9 }
  0x7c   : > { %1675 = vmatprep.mubr.msk.bf16.mxu0 %vm2095_vm1, %v2094_v10 }
 0x14e   : > { %v339_v11 = vpop.f32.mrb[0].mxu0 }
 0x14f   : > { %v341_v12 = vpop.f32.mrb[1].mxu0 }
 0x150   : > { %v343_v13 = vpop.f32.mrb[2].mxu0 }
 0x151   : > { %v2335_v14 = vpack.c.bf16 %v343_v13, %v339_v11  ;;  %v345_v15 = vpop.f32.mrb[3].mxu0 }
 0x152   : > { %v2337_v16 = vpack.c.bf16 %v345_v15, %v341_v12 }
 0x153   : > { %351 = vrot.lane.b32.xlu0 %v2335_v14, %s2096_s21 }
 0x1c5   : > { %v352_v17 = vpop.permute.xlu0 %351 }
 0x1c6   : > { %v358_v18 = vsel %vm353_vm2, %v352_v17, 0 }
 0x1c7   : > { %1650 = vmatpush3.bf16.xpose.msra.mxu1 %v358_v18 }
 0x1c8   : > { %1655 = vmatprep.subr.bf16.mxu1 %v2094_v10 }
 0x1ce   : > { %1652 = vmatmul.mubr.msk.bf16.vlgmr.msra.gmra.mrb[0].mxu1 %vm353_vm2, %v2335_v14 }
 0x1cf   : > { %1656 = vmatpush3.bf16.msra.mxu1 %v2337_v16  ;;  %1657 = vmatprep.mubr.msk.bf16.mxu1 %vm2095_vm1, %v2094_v10 }
 0x1d0   : > { %1661 = vmatprep.subr.bf16.mxu1 %v2094_v10 }
 0x2a1   : > { %v394_v19 = vpop.f32.mrb[0].mxu1 }
 0x2a2   : > { %v1653_v20 = vpop.f32.mrb[1].mxu1  ;;  %v402_v21 = vsel %vm401_vm3, %v394_v19, -inf }
 0x2a3   : > { %403 = vmax.xlane.f32.xlu0 %v402_v21  ;;  %v397_v22 = vpop.f32.mrb[2].mxu1 }
 0x2a4   : > { %v1654_v23 = vpop.f32.mrb[3].mxu1  ;;  %v405_v24 = vsel %vm401_vm3, %v397_v22, -inf }
 0x2a5   : > { %406 = vmax.xlane.f32.xlu1 %v405_v24 }
 0x2b6   : > { %473 = vrot.lane.b32.xlu1 %v2335_v14, %s2097_s23 }
 0x2b9   : > { %600 = vrot.lane.b32.xlu0 %v2335_v14, %s2098_s7 }
 0x2bd   : > { %984 = vrot.lane.b32.xlu0 %v2335_v14, %s2099_s8 }
 0x2c1   : > { %1112 = vrot.lane.b32.xlu0 %v2335_v14, %s2100_s30 }
 0x2c5   : > { %1240 = vrot.lane.b32.xlu0 %v2335_v14, %s2101_s6 }
 0x330   : > { %v404_v25 = vpop.xlane.xlu0 %403 }
 0x331   : > { %v408_v26 = vsub.f32 %v394_v19, %v404_v25 }
 0x332   : > { %v407_v27 = vpop.xlane.xlu1 %406 }
 0x333   : > { %v410_v28 = vmul.f32 1.442695, %v408_v26  ;;  %v409_v29 = vsub.f32 %v397_v22, %v407_v27 }
 0x334   : > { %v601_v47 = vpop.permute.xlu0 %600 }
 0x335   : > { %1864 = vpow2.f32 %v410_v28  ;;  %v412_v30 = vmul.f32 1.442695, %v409_v29 }
 0x336   : > { %v474_v35 = vpop.permute.xlu1 %473 }
 0x337   : > { %1866 = vpow2.f32 %v412_v30  ;;  %v479_v48 = vsel %vm353_vm2, %v474_v35, 0 }
 0x338   : > { %v985_v57 = vpop.permute.xlu0 %984 }
 0x33c   : > { %v1113_v60 = vpop.permute.xlu0 %1112 }
 0x33f   : > { %v1865_v31 = vpop.eup %1864 }
 0x340   : > { %v414_v32 = vsel %vm401_vm3, %v1865_v31, 0.0  ;;  %v1241_v62 = vpop.permute.xlu0 %1240 }
 0x341   : > { %v1867_v33 = vpop.eup %1866  ;;  %415 = vadd.xlane.f32.xlu1 %v414_v32 }
 0x342   : > { %v417_v34 = vsel %vm401_vm3, %v1867_v33, 0.0 }
 0x345   : > { %418 = vadd.xlane.f32.xlu1 %v417_v34 }
 0x356   : > { %471 = vrot.lane.b32.xlu1 %v2335_v14, %s2102_s25 }
 0x35a   : > { %602 = vrot.lane.b32.xlu1 %v2335_v14, %s2103_s9 }
 0x35e   : > { %730 = vrot.lane.b32.xlu1 %v2335_v14, %s2104_s27 }
 0x362   : > { %728 = vrot.lane.b32.xlu1 %v2335_v14, %s2105_s20 }
 0x366   : > { %858 = vrot.lane.b32.xlu1 %v2335_v14, %s2106_s29 }
 0x36a   : > { %856 = vrot.lane.b32.xlu1 %v2335_v14, %s2107_s5 }
 0x36e   : > { %986 = vrot.lane.b32.xlu1 %v2335_v14, %s2108_s12 }
 0x372   : > { %1114 = vrot.lane.b32.xlu1 %v2335_v14, %s2109_s13 }
 0x376   : > { %1242 = vrot.lane.b32.xlu1 %v2335_v14, %s2110_s24 }
 0x3ce   : > { %v416_v36 = vpop.xlane.xlu1 %415 }
 0x3cf   : > { %1868 = vrcp.f32 %v416_v36 }
 0x3d2   : > { %v419_v37 = vpop.xlane.xlu1 %418 }
 0x3d3   : > { %1870 = vrcp.f32 %v419_v37 }
 0x3d6   : > { %v472_v38 = vpop.permute.xlu1 %471 }
 0x3d9   : > { %v1869_v40 = vpop.eup %1868 }
 0x3da   : > { %v603_v39 = vpop.permute.xlu1 %602  ;;  %v422_v43 = vmul.f32 %v1869_v40, %v1865_v31 }
 0x3db   : > { %v608_v41 = vsel %vm353_vm2, %v603_v39, 0 }
 0x3dc   : > { %1674 = vmatpush3.bf16.xpose.msra.mxu0 %v608_v41 }
 0x3dd   : > { %v1871_v42 = vpop.eup %1870  ;;  %1685 = vmatprep.subr.bf16.mxu0 %v2094_v10 }
 0x3de   : > { %v423_v44 = vmul.f32 %v1871_v42, %v1867_v33  ;;  %v731_v45 = vpop.permute.xlu1 %730 }
 0x3df   : > { %v736_v50 = vsel %vm353_vm2, %v731_v45, 0 }
 0x3e0   : > { %v424_v46 = vpack.c.bf16 %v423_v44, %v422_v43 }
 0x3e2   : > { %v729_v49 = vpop.permute.xlu1 %728  ;;  %1658 = vmatmul.mubr.msk.bf16.vlgmr.msra.gmra.mrb[4].mxu1 %vm401_vm3, %v424_v46 }
 0x3e3   : > { %1662 = vmatpush3.bf16.xpose.msra.mxu1 %v479_v48  ;;  %1676 = vmatmul.mubr.msk.bf16.vlgmr.msra.gmra.mrb[4].mxu0 %vm353_vm2, %v601_v47 }
 0x3e4   : > { %1686 = vmatpush3.bf16.xpose.msra.mxu0 %v736_v50  ;;  %1663 = vmatprep.mubr.msk.bf16.mxu1 %vm2095_vm1, %v2094_v10 }
 0x3e5   : > { %1687 = vmatprep.mubr.msk.bf16.mxu0 %vm2095_vm1, %v2094_v10  ;;  %1697 = vmatprep.subr.bf16.mxu0 %v2094_v10 }
 0x3e6   : > { %v859_v51 = vpop.permute.xlu1 %858  ;;  %1667 = vmatprep.subr.bf16.mxu1 %v2094_v10 }
 0x3e7   : > { %v864_v53 = vsel %vm353_vm2, %v859_v51, 0 }
 0x3ea   : > { %v857_v52 = vpop.permute.xlu1 %856  ;;  %1664 = vmatmul.mubr.msk.bf16.vlgmr.msra.gmra.mrb[8].mxu1 %vm353_vm2, %v472_v38 }
 0x3eb   : > { %1688 = vmatmul.mubr.msk.bf16.vlgmr.msra.gmra.mrb[8].mxu0 %vm353_vm2, %v729_v49  ;;  %1669 = vmatprep.mubr.msk.bf16.mxu1 %vm2095_vm1, %v2094_v10 }
 0x3ec   : > { %1698 = vmatpush3.bf16.xpose.msra.mxu0 %v864_v53  ;;  %1699 = vmatprep.mubr.msk.bf16.mxu0 %vm2095_vm1, %v2094_v10 }
 0x3ed   : > { %1709 = vmatprep.subr.bf16.mxu0 %v2094_v10 }
 0x3ee   : > { %v987_v54 = vpop.permute.xlu1 %986 }
 0x3ef   : > { %v992_v55 = vsel %vm353_vm2, %v987_v54, 0 }
 0x3f2   : > { %v1115_v56 = vpop.permute.xlu1 %1114 }
 0x3f3   : > { %1700 = vmatmul.mubr.msk.bf16.vlgmr.msra.gmra.mrb[12].mxu0 %vm353_vm2, %v857_v52  ;;  %v1120_v58 = vsel %vm353_vm2, %v1115_v56, 0 }
 0x3f4   : > { %1710 = vmatpush3.bf16.xpose.msra.mxu0 %v992_v55  ;;  %1711 = vmatprep.mubr.msk.bf16.mxu0 %vm2095_vm1, %v2094_v10 }
 0x3f5   : > { %1721 = vmatprep.subr.bf16.mxu0 %v2094_v10 }
 0x3f6   : > { %v1243_v59 = vpop.permute.xlu1 %1242 }
 0x3f7   : > { %v1248_v61 = vsel %vm353_vm2, %v1243_v59, 0 }
 0x3fb   : > { %1712 = vmatmul.mubr.msk.bf16.vlgmr.msra.gmra.mrb[16].mxu0 %vm353_vm2, %v985_v57 }
 0x3fc   : > { %1722 = vmatpush3.bf16.xpose.msra.mxu0 %v1120_v58  ;;  %1723 = vmatprep.mubr.msk.bf16.mxu0 %vm2095_vm1, %v2094_v10 }
 0x3fd   : > { %1733 = vmatprep.subr.bf16.mxu0 %v2094_v10 }
 0x403   : > { %1724 = vmatmul.mubr.msk.bf16.vlgmr.msra.gmra.mrb[20].mxu0 %vm353_vm2, %v1113_v60 }
 0x404   : > { %1734 = vmatpush3.bf16.xpose.msra.mxu0 %v1248_v61  ;;  %1735 = vmatprep.mubr.msk.bf16.mxu0 %vm2095_vm1, %v2094_v10 }
 0x405   : > { %1745 = vmatprep.subr.bf16.mxu0 %v2094_v10 }
 0x40b   : > { %1736 = vmatmul.mubr.msk.bf16.vlgmr.msra.gmra.mrb[24].mxu0 %vm353_vm2, %v1241_v62 }
 0x40c   : > { %1753 = vmatprep.mubr.msk.bf16.mxu0 %vm2095_vm1, %v2094_v10 }
 0x4b5   : > { %v462_v63 = vpop.f32.mrb[4].mxu1 }
 0x4b6   : > { %v1659_v0 = vpop.f32.mrb[5].mxu1  ;;  %v2418_v1 = vpop.f32.mrb[4].mxu0 }
 0x4b7   : > { %v465_v2 = vpop.f32.mrb[6].mxu1  ;;  %v1677_v3 = vpop.f32.mrb[5].mxu0  ;;  %v651_v21 = vsel %vm401_vm3, %v2418_v1, -inf }
 0x4b8   : > { %v469_v4 = vpack.c.bf16 %v465_v2, %v462_v63  ;;  %v1660_v5 = vpop.f32.mrb[7].mxu1  ;;  %v647_v6 = vpop.f32.mrb[6].mxu0 }
 0x4b9   : > { %v1678_v7 = vpop.f32.mrb[7].mxu0  ;;  %v654_v20 = vsel %vm401_vm3, %v647_v6, -inf }
 0x4ba   : > { %470 = vst.msk [vmem:[#allocation2] sm:$0xff] %vm353_vm2, %v469_v4 }
 0x4bd   : > { %v2421_v8 = vpop.f32.mrb[8].mxu1 }
 0x4be   : > { %v1665_v9 = vpop.f32.mrb[9].mxu1  ;;  %v2423_v11 = vpop.f32.mrb[8].mxu0  ;;  %v522_v12 = vsel %vm401_vm3, %v2421_v8, -inf }
 0x4bf   : > { %v1689_v13 = vpop.f32.mrb[9].mxu0  ;;  %523 = vmax.xlane.f32.xlu1 %v522_v12  ;;  %v2427_v14 = vpop.f32.mrb[10].mxu1  ;;  %v779_v26 = vsel %vm401_vm3, %v2423_v11, -inf }
 0x4c0   : > { %v1666_v15 = vpop.f32.mrb[11].mxu1  ;;  %v775_v17 = vpop.f32.mrb[10].mxu0  ;;  %v525_v18 = vsel %vm401_vm3, %v2427_v14, -inf }
 0x4c1   : > { %v1690_v19 = vpop.f32.mrb[11].mxu0  ;;  %526 = vmax.xlane.f32.xlu0 %v525_v18  ;;  %v782_v23 = vsel %vm401_vm3, %v775_v17, -inf }
 0x4c3   : > { %655 = vmax.xlane.f32.xlu1 %v654_v20 }
 0x4c5   : > { %652 = vmax.xlane.f32.xlu0 %v651_v21 }
 0x4c6   : > { %v900_v22 = vpop.f32.mrb[12].mxu0 }
 0x4c7   : > { %v1701_v24 = vpop.f32.mrb[13].mxu0  ;;  %783 = vmax.xlane.f32.xlu1 %v782_v23  ;;  %v907_v29 = vsel %vm401_vm3, %v900_v22, -inf }
 0x4c8   : > { %v903_v25 = vpop.f32.mrb[14].mxu0 }
 0x4c9   : > { %v1702_v27 = vpop.f32.mrb[15].mxu0  ;;  %780 = vmax.xlane.f32.xlu0 %v779_v26  ;;  %v910_v28 = vsel %vm401_vm3, %v903_v25, -inf }
 0x4cb   : > { %911 = vmax.xlane.f32.xlu1 %v910_v28 }
 0x4cd   : > { %908 = vmax.xlane.f32.xlu0 %v907_v29 }
 0x4ce   : > { %v1028_v30 = vpop.f32.mrb[16].mxu0 }
 0x4cf   : > { %v1713_v31 = vpop.f32.mrb[17].mxu0  ;;  %v1035_v32 = vsel %vm401_vm3, %v1028_v30, -inf }
 0x4d0   : > { %v1031_v33 = vpop.f32.mrb[18].mxu0 }
 0x4d1   : > { %v1714_v34 = vpop.f32.mrb[19].mxu0  ;;  %1036 = vmax.xlane.f32.xlu0 %v1035_v32  ;;  %v1038_v35 = vsel %vm401_vm3, %v1031_v33, -inf }
 0x4d2   : > { %1039 = vmax.xlane.f32.xlu1 %v1038_v35 }
 0x4d6   : > { %v2441_v36 = vpop.f32.mrb[20].mxu0 }
 0x4d7   : > { %v1725_v37 = vpop.f32.mrb[21].mxu0  ;;  %v1163_v38 = vsel %vm401_vm3, %v2441_v36, -inf }
 0x4d8   : > { %v2445_v39 = vpop.f32.mrb[22].mxu0  ;;  %1164 = vmax.xlane.f32.xlu0 %v1163_v38 }
 0x4d9   : > { %v1726_v40 = vpop.f32.mrb[23].mxu0  ;;  %v1166_v41 = vsel %vm401_vm3, %v2445_v39, -inf }
 0x4da   : > { %1167 = vmax.xlane.f32.xlu1 %v1166_v41 }
 0x4de   : > { %v2449_v42 = vpop.f32.mrb[24].mxu0 }
 0x4df   : > { %v1737_v43 = vpop.f32.mrb[25].mxu0  ;;  %v1291_v44 = vsel %vm401_vm3, %v2449_v42, -inf }
 0x4e0   : > { %v2453_v45 = vpop.f32.mrb[26].mxu0  ;;  %1292 = vmax.xlane.f32.xlu0 %v1291_v44 }
 0x4e1   : > { %v1738_v46 = vpop.f32.mrb[27].mxu0  ;;  %v1294_v47 = vsel %vm401_vm3, %v2453_v45, -inf }
 0x4e2   : > { %1295 = vmax.xlane.f32.xlu1 %v1294_v47 }
 0x54c   : > { %v524_v48 = vpop.xlane.xlu1 %523 }
 0x54d   : > { %v528_v62 = vsub.f32 %v2421_v8, %v524_v48 }
 0x54e   : > { %v527_v49 = vpop.xlane.xlu0 %526 }
 0x54f   : > { %v529_v15 = vsub.f32 %v2427_v14, %v527_v49 }
 0x550   : > { %v656_v50 = vpop.xlane.xlu1 %655 }
 0x551   : > { %v658_v51 = vsub.f32 %v647_v6, %v656_v50  ;;  %v532_v23 = vmul.f32 1.442695, %v529_v15 }
 0x552   : > { %v653_v52 = vpop.xlane.xlu0 %652 }
 0x553   : > { %v661_v53 = vmul.f32 1.442695, %v658_v51  ;;  %v657_v54 = vsub.f32 %v2418_v1, %v653_v52  ;;  %v530_v1 = vmul.f32 1.442695, %v528_v62 }
 0x554   : > { %v784_v55 = vpop.xlane.xlu1 %783 }
 0x555   : > { %1872 = vpow2.f32 %v661_v53  ;;  %v659_v56 = vmul.f32 1.442695, %v657_v54  ;;  %v786_v57 = vsub.f32 %v775_v17, %v784_v55 }
 0x556   : > { %v781_v58 = vpop.xlane.xlu0 %780 }
 0x557   : > { %1874 = vpow2.f32 %v659_v56  ;;  %v789_v59 = vmul.f32 1.442695, %v786_v57  ;;  %v785_v60 = vsub.f32 %v2423_v11, %v781_v58 }
 0x558   : > { %v912_v61 = vpop.xlane.xlu1 %911 }
 0x559   : > { %1876 = vpow2.f32 %v789_v59  ;;  %v787_v63 = vmul.f32 1.442695, %v785_v60  ;;  %v914_v0 = vsub.f32 %v903_v25, %v912_v61 }
 0x55a   : > { %v909_v2 = vpop.xlane.xlu0 %908 }
 0x55b   : > { %1878 = vpow2.f32 %v787_v63  ;;  %v917_v3 = vmul.f32 1.442695, %v914_v0  ;;  %v913_v4 = vsub.f32 %v900_v22, %v909_v2 }
 0x55d   : > { %1880 = vpow2.f32 %v917_v3  ;;  %v915_v5 = vmul.f32 1.442695, %v913_v4 }
 0x55e   : > { %v1037_v6 = vpop.xlane.xlu0 %1036 }
 0x55f   : > { %v2460_v7 = vpop.eup %1872  ;;  %1882 = vpow2.f32 %v915_v5  ;;  %v1041_v9 = vsub.f32 %v1028_v30, %v1037_v6  ;;  %v1040_v12 = vpop.xlane.xlu1 %1039 }
 0x560   : > { %v1042_v11 = vsub.f32 %v1031_v33, %v1040_v12  ;;  %v666_v8 = vsel %vm401_vm3, %v2460_v7, 0.0  ;;  %1884 = vpow2.f32 %v530_v1 }
 0x561   : > { %v2464_v13 = vpop.eup %1874  ;;  %v1043_v17 = vmul.f32 1.442695, %v1041_v9  ;;  %667 = vadd.xlane.f32.xlu1 %v666_v8 }
 0x562   : > { %v1045_v18 = vmul.f32 1.442695, %v1042_v11  ;;  %v663_v19 = vsel %vm401_vm3, %v2464_v13, 0.0 }
 0x563   : > { %v2469_v20 = vpop.eup %1876  ;;  %1886 = vpow2.f32 %v1043_v17  ;;  %664 = vadd.xlane.f32.xlu0 %v663_v19 }
 0x564   : > { %v794_v21 = vsel %vm401_vm3, %v2469_v20, 0.0  ;;  %1888 = vpow2.f32 %v1045_v18 }
 0x565   : > { %v2473_v22 = vpop.eup %1878  ;;  %795 = vadd.xlane.f32.xlu1 %v794_v21  ;;  %1890 = vpow2.f32 %v532_v23  ;;  %v1165_v37 = vpop.xlane.xlu0 %1164 }
 0x566   : > { %v791_v14 = vsel %vm401_vm3, %v2473_v22, 0.0  ;;  %v1169_v38 = vsub.f32 %v2441_v36, %v1165_v37 }
 0x567   : > { %v2477_v24 = vpop.eup %1880  ;;  %792 = vadd.xlane.f32.xlu0 %v791_v14  ;;  %v1168_v41 = vpop.xlane.xlu1 %1167 }
 0x568   : > { %v922_v25 = vsel %vm401_vm3, %v2477_v24, 0.0  ;;  %v1171_v40 = vmul.f32 1.442695, %v1169_v38  ;;  %v1170_v43 = vsub.f32 %v2445_v39, %v1168_v41 }
 0x569   : > { %v2481_v26 = vpop.eup %1882  ;;  %923 = vadd.xlane.f32.xlu1 %v922_v25 }
 0x56a   : > { %v919_v27 = vsel %vm401_vm3, %v2481_v26, 0.0  ;;  %v2485_v28 = vpop.eup %1884  ;;  %1892 = vpow2.f32 %v1171_v40  ;;  %v1173_v46 = vmul.f32 1.442695, %v1170_v43 }
 0x56b   : > { %920 = vadd.xlane.f32.xlu0 %v919_v27  ;;  %v534_v30 = vsel %vm401_vm3, %v2485_v28, 0.0 }
 0x56c   : > { %1894 = vpow2.f32 %v1173_v46 }
 0x56d   : > { %v2487_v29 = vpop.eup %1886  ;;  %v1293_v44 = vpop.xlane.xlu0 %1292 }
 0x56e   : > { %v1047_v31 = vsel %vm401_vm3, %v2487_v29, 0.0  ;;  %v2493_v32 = vpop.eup %1888  ;;  %v1297_v47 = vsub.f32 %v2449_v42, %v1293_v44 }
 0x56f   : > { %535 = vadd.xlane.f32.xlu0 %v534_v30  ;;  %1048 = vadd.xlane.f32.xlu1 %v1047_v31  ;;  %v1050_v33 = vsel %vm401_vm3, %v2493_v32, 0.0  ;;  %v2497_v34 = vpop.eup %1890  ;;  %v1296_v48 = vpop.xlane.xlu1 %1295 }
 0x570   : > { %v537_v35 = vsel %vm401_vm3, %v2497_v34, 0.0  ;;  %v1299_v49 = vmul.f32 1.442695, %v1297_v47  ;;  %v1298_v50 = vsub.f32 %v2453_v45, %v1296_v48 }
 0x572   : > { %1896 = vpow2.f32 %v1299_v49  ;;  %v1301_v52 = vmul.f32 1.442695, %v1298_v50 }
 0x573   : > { %1051 = vadd.xlane.f32.xlu1 %v1050_v33 }
 0x574   : > { %v2509_v51 = vpop.eup %1892  ;;  %1898 = vpow2.f32 %v1301_v52 }
 0x575   : > { %v1175_v36 = vsel %vm401_vm3, %v2509_v51, 0.0 }
 0x576   : > { %v2513_v53 = vpop.eup %1894 }
 0x577   : > { %538 = vadd.xlane.f32.xlu1 %v537_v35  ;;  %v1178_v39 = vsel %vm401_vm3, %v2513_v53, 0.0 }
 0x57c   : > { %v2517_v42 = vpop.eup %1896 }
 0x57d   : > { %v1303_v45 = vsel %vm401_vm3, %v2517_v42, 0.0 }
 0x57e   : > { %v2521_v54 = vpop.eup %1898 }
 0x57f   : > { %v1306_v55 = vsel %vm401_vm3, %v2521_v54, 0.0 }
 0x585   : > { %546 = vrot.lane.b32.xlu0 %v2337_v16, %s2102_s25 }
 0x588   : > { %674 = vrot.lane.b32.xlu1 %v2337_v16, %s2098_s7  ;;  %s244_s7 = scalar_lea.vmem [#allocation9], %s1572_s28 }
 0x5a4   : > { %1176 = vadd.xlane.f32.xlu0 %v1175_v36 }
 0x5ac   : > { %1179 = vadd.xlane.f32.xlu1 %v1178_v39 }
 0x5b0   : > { %1304 = vadd.xlane.f32.xlu1 %v1303_v45 }
 0x5b4   : > { %1307 = vadd.xlane.f32.xlu1 %v1306_v55 }
 0x5ba   : > { %802 = vrot.lane.b32.xlu0 %v2337_v16, %s2105_s20  ;;  %s2111_s20 = smov [#allocation9]  }
 0x5be   : > { %1058 = vrot.lane.b32.xlu0 %v2337_v16, %s2099_s8  ;;  %s1468_s8 = sshll.u32 %s244_s7, 4  ;;  %s2590_s8 = int_to_ptr.vmem [resolvable:$true] %s1468_s8 }
 0x5c2   : > { %1186 = vrot.lane.b32.xlu0 %v2337_v16, %s2100_s30  ;;  %s1611_s30 = sshll.u32 %s2159_s19, 8  ;;  %s1455_s19 = scalar_lea.sflag [#allocation5], %s2316_s10 }
 0x5c5   : > { %930 = vrot.lane.b32.xlu1 %v2337_v16, %s2107_s5 }
 0x5c6   : > { %1314 = vrot.lane.b32.xlu0 %v2337_v16, %s2101_s6 }
 0x5ee   : > { %v668_v56 = vpop.xlane.xlu1 %667 }
 0x5f0   : > { %v665_v57 = vpop.xlane.xlu0 %664 }
 0x5f2   : > { %v796_v58 = vpop.xlane.xlu1 %795 }
 0x5f4   : > { %v793_v59 = vpop.xlane.xlu0 %792 }
 0x5f6   : > { %v924_v60 = vpop.xlane.xlu1 %923 }
 0x5f7   : > { %1900 = vrcp.f32 %v924_v60 }
 0x5f8   : > { %v921_v61 = vpop.xlane.xlu0 %920 }
 0x5f9   : > { %1902 = vrcp.f32 %v921_v61 }
 0x5fc   : > { %v1049_v62 = vpop.xlane.xlu1 %1048  ;;  %v536_v63 = vpop.xlane.xlu0 %535 }
 0x5fd   : > { %1904 = vrcp.f32 %v1049_v62 }
 0x600   : > { %v1052_v0 = vpop.xlane.xlu1 %1051  ;;  %v547_v2 = vpop.permute.xlu0 %546 }
 0x601   : > { %v1901_v3 = vpop.eup %1900  ;;  %1906 = vrcp.f32 %v1052_v0  ;;  %1668 = vmatpush3.bf16.msra.mxu1 %v547_v2 }
 0x602   : > { %1679 = vmatprep.subr.bf16.mxu1 %v2094_v10  ;;  %1908 = vrcp.f32 %v536_v63  ;;  %v928_v16 = vmul.f32 %v1901_v3, %v2477_v24 }
 0x603   : > { %v1903_v4 = vpop.eup %1902 }
 0x604   : > { %v927_v1 = vmul.f32 %v1903_v4, %v2481_v26  ;;  %v539_v5 = vpop.xlane.xlu1 %538 }
 0x605   : > { %1910 = vrcp.f32 %v539_v5  ;;  %v1860_v5 = vld [vmem:[#allocation8] sm:$0xff]  }
 0x606   : > { %v929_v6 = vpack.c.bf16 %v928_v16, %v927_v1  ;;  %1912 = vrcp.f32 %v665_v57  ;;  %1746 = vmatpush3.bf16.msra.mxu0 %v1860_v5 }
 0x607   : > { %v1905_v9 = vpop.eup %1904  ;;  %1914 = vrcp.f32 %v668_v56  ;;  %1747 = vmatprep.subr.bf16.mxu0 %v2094_v10 }
 0x608   : > { %v1055_v11 = vmul.f32 %v1905_v9, %v2487_v29  ;;  %v675_v24 = vpop.permute.xlu1 %674  ;;  %1916 = vrcp.f32 %v793_v59 }
 0x609   : > { %1918 = vrcp.f32 %v796_v58 }
 0x60b   : > { %v1907_v12 = vpop.eup %1906 }
 0x60c   : > { %v1056_v8 = vmul.f32 %v1907_v12, %v2493_v32  ;;  %v1909_v15 = vpop.eup %1908  ;;  %v1861_v12 = vld [vmem:[#allocation8 + $0x8] sm:$0xff]  }
 0x60d   : > { %v542_v19 = vmul.f32 %v1909_v15, %v2485_v28  ;;  %1748 = vmatpush3.bf16.msra.mxu0 %v1861_v12 }
 0x60e   : > { %v1057_v17 = vpack.c.bf16 %v1056_v8, %v1055_v11  ;;  %1749 = vmatprep.subr.bf16.mxu0 %v2094_v10 }
 0x60f   : > { %v1911_v18 = vpop.eup %1910 }
 0x610   : > { %v543_v21 = vmul.f32 %v1911_v18, %v2497_v34  ;;  %v1913_v14 = vpop.eup %1912 }
 0x611   : > { %v1915_v25 = vpop.eup %1914  ;;  %v671_v26 = vmul.f32 %v1913_v14, %v2464_v13 }
 0x612   : > { %v544_v23 = vpack.c.bf16 %v543_v21, %v542_v19  ;;  %v672_v27 = vmul.f32 %v1915_v25, %v2460_v7  ;;  %v1917_v28 = vpop.eup %1916  ;;  %v1863_v21 = vld [vmem:[#allocation8 + $0x18] sm:$0xff]  }
 0x613   : > { %v1919_v31 = vpop.eup %1918  ;;  %v799_v32 = vmul.f32 %v1917_v28, %v2473_v22 }
 0x614   : > { %1670 = vmatmul.mubr.msk.bf16.vlgmr.msra.gmra.mrb[12].mxu1 %vm401_vm3, %v544_v23  ;;  %v673_v29 = vpack.c.bf16 %v672_v27, %v671_v26  ;;  %v800_v33 = vmul.f32 %v1919_v31, %v2469_v20 }
 0x615   : > { %1680 = vmatpush3.bf16.msra.mxu1 %v675_v24  ;;  %1681 = vmatprep.mubr.msk.bf16.mxu1 %vm2095_vm1, %v2094_v10 }
 0x616   : > { %1691 = vmatprep.subr.bf16.mxu1 %v2094_v10  ;;  %v801_v34 = vpack.c.bf16 %v800_v33, %v799_v32 }
 0x61c   : > { %1682 = vmatmul.mubr.msk.bf16.vlgmr.msra.gmra.mrb[16].mxu1 %vm401_vm3, %v673_v29 }
 0x61d   : > { %1693 = vmatprep.mubr.msk.bf16.mxu1 %vm2095_vm1, %v2094_v10 }
 0x631   : > { %v1177_v30 = vpop.xlane.xlu0 %1176 }
 0x635   : > { %v803_v13 = vpop.permute.xlu0 %802 }
 0x636   : > { %1692 = vmatpush3.bf16.msra.mxu1 %v803_v13 }
 0x637   : > { %1703 = vmatprep.subr.bf16.mxu1 %v2094_v10 }
 0x639   : > { %v1180_v7 = vpop.xlane.xlu1 %1179  ;;  %1694 = vmatmul.mubr.msk.bf16.vlgmr.msra.gmra.mrb[20].mxu1 %vm401_vm3, %v801_v34  ;;  %v1059_v20 = vpop.permute.xlu0 %1058 }
 0x63a   : > { %1705 = vmatprep.mubr.msk.bf16.mxu1 %vm2095_vm1, %v2094_v10  ;;  %1920 = vrcp.f32 %v1180_v7  ;;  %v1599_v7 = vld [vmem:[%s2645_s3] ss:$0 sm:$0xff] }
 0x63b   : > { %1922 = vrcp.f32 %v1177_v30 }
 0x63d   : > { %v1305_v35 = vpop.xlane.xlu1 %1304  ;;  %v1187_v40 = vpop.permute.xlu0 %1186 }
 0x641   : > { %v1308_v37 = vpop.xlane.xlu1 %1307  ;;  %v1315_v48 = vpop.permute.xlu0 %1314 }
 0x642   : > { %1924 = vrcp.f32 %v1308_v37 }
 0x643   : > { %1926 = vrcp.f32 %v1305_v35 }
 0x644   : > { %v1921_v22 = vpop.eup %1920 }
 0x645   : > { %v931_v38 = vpop.permute.xlu1 %930  ;;  %v1923_v41 = vpop.eup %1922  ;;  %v1184_v43 = vmul.f32 %v1921_v22, %v2513_v53 }
 0x646   : > { %1704 = vmatpush3.bf16.msra.mxu1 %v931_v38  ;;  %v1183_v44 = vmul.f32 %v1923_v41, %v2509_v51 }
 0x647   : > { %1715 = vmatprep.subr.bf16.mxu1 %v2094_v10 }
 0x648   : > { %v1185_v46 = vpack.c.bf16 %v1184_v43, %v1183_v44 }
 0x649   : > { %1706 = vmatmul.mubr.msk.bf16.vlgmr.msra.gmra.mrb[24].mxu1 %vm401_vm3, %v929_v6 }
 0x64a   : > { %1716 = vmatpush3.bf16.msra.mxu1 %v1059_v20  ;;  %1717 = vmatprep.mubr.msk.bf16.mxu1 %vm2095_vm1, %v2094_v10 }
 0x64b   : > { %1727 = vmatprep.subr.bf16.mxu1 %v2094_v10 }
 0x64c   : > { %v1925_v47 = vpop.eup %1924 }
 0x64d   : > { %v1927_v49 = vpop.eup %1926  ;;  %v1312_v50 = vmul.f32 %v1925_v47, %v2521_v54 }
 0x64e   : > { %v1311_v52 = vmul.f32 %v1927_v49, %v2517_v42 }
 0x650   : > { %v1313_v36 = vpack.c.bf16 %v1312_v50, %v1311_v52 }
 0x651   : > { %1718 = vmatmul.mubr.msk.bf16.vlgmr.msra.gmra.mrb[28].mxu1 %vm401_vm3, %v1057_v17  ;;  %v1862_v17 = vld [vmem:[#allocation8 + $0x10] sm:$0xff]  }
 0x652   : > { %1728 = vmatpush3.bf16.msra.mxu1 %v1187_v40  ;;  %1729 = vmatprep.mubr.msk.bf16.mxu1 %vm2095_vm1, %v2094_v10 }
 0x653   : > { %1739 = vmatprep.subr.bf16.mxu1 %v2094_v10  ;;  %1750 = vmatpush3.bf16.msra.mxu0 %v1862_v17 }
 0x654   : > { %1751 = vmatprep.subr.bf16.mxu0 %v2094_v10 }
 0x657   : > { %1752 = vmatpush3.bf16.msra.mxu0 %v1863_v21 }
 0x659   : > { %1730 = vmatmul.mubr.msk.bf16.vlgmr.msra.gmra.mrb[32].mxu1 %vm401_vm3, %v1185_v46 }
 0x65a   : > { %1740 = vmatpush3.bf16.msra.mxu1 %v1315_v48  ;;  %1741 = vmatprep.mubr.msk.bf16.mxu1 %vm2095_vm1, %v2094_v10 }
 0x661   : > { %1742 = vmatmul.mubr.msk.bf16.vlgmr.msra.gmra.mrb[36].mxu1 %vm401_vm3, %v1313_v36 }
 0x6e7   : > { %v586_v53 = vpop.f32.mrb[12].mxu1 }
 0x6e8   : > { %v1671_v39 = vpop.f32.mrb[13].mxu1 }
 0x6e9   : > { %v589_v51 = vpop.f32.mrb[14].mxu1 }
 0x6ea   : > { %v593_v45 = vpack.c.bf16 %v589_v51, %v586_v53  ;;  %v1672_v55 = vpop.f32.mrb[15].mxu1 }
 0x6ec   : > { %595 = vrot.lane.b32.xlu0 %v593_v45, %s2110_s24 }
 0x6ef   : > { %v714_v56 = vpop.f32.mrb[16].mxu1 }
 0x6f0   : > { %v1683_v57 = vpop.f32.mrb[17].mxu1 }
 0x6f1   : > { %v717_v58 = vpop.f32.mrb[18].mxu1 }
 0x6f2   : > { %v721_v59 = vpack.c.bf16 %v717_v58, %v714_v56  ;;  %v1684_v60 = vpop.f32.mrb[19].mxu1 }
 0x6f4   : > { %723 = vrot.lane.b32.xlu1 %v721_v59, %s2109_s13 }
 0x70c   : > { %v842_v54 = vpop.f32.mrb[20].mxu1 }
 0x70d   : > { %v1695_v61 = vpop.f32.mrb[21].mxu1 }
 0x70e   : > { %v845_v42 = vpop.f32.mrb[22].mxu1 }
 0x70f   : > { %v849_v62 = vpack.c.bf16 %v845_v42, %v842_v54  ;;  %v1696_v63 = vpop.f32.mrb[23].mxu1 }
 0x711   : > { %851 = vrot.lane.b32.xlu0 %v849_v62, %s2108_s12 }
 0x71c   : > { %v970_v0 = vpop.f32.mrb[24].mxu1 }
 0x71d   : > { %v1707_v2 = vpop.f32.mrb[25].mxu1 }
 0x71e   : > { %v973_v3 = vpop.f32.mrb[26].mxu1 }
 0x71f   : > { %v977_v4 = vpack.c.bf16 %v973_v3, %v970_v0  ;;  %v1708_v16 = vpop.f32.mrb[27].mxu1 }
 0x721   : > { %979 = vrot.lane.b32.xlu1 %v977_v4, %s2106_s29  ;;  %s2018_s29 = sshll.u32 %s2111_s20, 4  ;;  %s2019_s29 = int_to_ptr.vmem [resolvable:$false] %s2018_s29 }
 0x722   : > { %s2020_s5 = scalar_lea.vmem %s2019_s29, 512  ;;  %p2021_p5 = scmp.lt.s32.totalorder %s2590_s8, %s2019_s29 }
 0x724   : > { %v1098_v1 = vpop.f32.mrb[28].mxu1 }
 0x725   : > { %v1719_v6 = vpop.f32.mrb[29].mxu1 }
 0x726   : > { %v1101_v9 = vpop.f32.mrb[30].mxu1 }
 0x727   : > { %v1105_v11 = vpack.c.bf16 %v1101_v9, %v1098_v1  ;;  %v1720_v8 = vpop.f32.mrb[31].mxu1 }
 0x729   : > { %1107 = vrot.lane.b32.xlu0 %v1105_v11, %s2104_s27  ;;  %s2014_s27 = scalar_lea.vmem %s2590_s8, 256 }
 0x72a   : > { %p2015_p8 = scmp.ne.s32.totalorder %s2590_s8, %s2014_s27  ;;  %p2022_p9 = scmp.lt.s32.totalorder %s2020_s5, %s2014_s27 }
 0x72c   : > { %v1226_v15 = vpop.f32.mrb[32].mxu1  ;;  %p2016_p1 = pnand %p2015_p8, %p2660_p0  ;;  %p2023_p12 = por %p2022_p9, %p2021_p5 }
 0x72d   : > { %v1731_v18 = vpop.f32.mrb[33].mxu1 }
 0x72e   : > { %v1229_v19 = vpop.f32.mrb[34].mxu1  ;;  %p2017_p3 = pneg %p2016_p1 }
 0x72f   : > { %v1233_v23 = vpack.c.bf16 %v1229_v19, %v1226_v15  ;;  %v1732_v14 = vpop.f32.mrb[35].mxu1 }
 0x730   : > { %p2024_p2 = pnand %p2023_p12, %p2017_p3 }
 0x731   : > { %1235 = vrot.lane.b32.xlu1 %v1233_v23, %s2103_s9  ;;  %s2596_s9 = scalar_lea.hbm %s2646_s4, %s1611_s30 }
 0x734   : > { %v1354_v24 = vpop.f32.mrb[36].mxu1 }
 0x735   : > { %v1743_v25 = vpop.f32.mrb[37].mxu1 }
 0x736   : > { %v1357_v26 = vpop.f32.mrb[38].mxu1 }
 0x737   : > { %v1361_v27 = vpack.c.bf16 %v1357_v26, %v1354_v24  ;;  %v1744_v29 = vpop.f32.mrb[39].mxu1 }
 0x739   : > { %1363 = vrot.lane.b32.xlu0 %v1361_v27, %s2097_s23 }
 0x75e   : > { %v596_v28 = vpop.permute.xlu0 %595 }
 0x75f   : > { %599 = vst.msk [vmem:[#allocation2] sm:$0xff] %vm598_vm4, %v596_v28 }
 0x766   : > { %v724_v30 = vpop.permute.xlu1 %723 }
 0x767   : > { %727 = vst.msk [vmem:[#allocation2] sm:$0xff] %vm726_vm5, %v724_v30 }
 0x783   : > { %v852_v31 = vpop.permute.xlu0 %851 }
 0x784   : > { %855 = vst.msk [vmem:[#allocation2] sm:$0xff] %vm854_vm6, %v852_v31 }
 0x793   : > { %v980_v10 = vpop.permute.xlu1 %979 }
 0x794   : > { %983 = vst.msk [vmem:[#allocation2] sm:$0xff] %vm982_vm7, %v980_v10 }
 0x79b   : > { %v1108_v32 = vpop.permute.xlu0 %1107 }
 0x79c   : > { %1111 = vst.msk [vmem:[#allocation2] sm:$0xff] %vm1110_vm8, %v1108_v32 }
 0x7a3   : > { %v1236_v33 = vpop.permute.xlu1 %1235 }
 0x7a4   : > { %1239 = vst.msk [vmem:[#allocation2] sm:$0xff] %vm1238_vm9, %v1236_v33 }
 0x7ab   : > { %v1364_v13 = vpop.permute.xlu0 %1363 }
 0x7ac   : > { %1367 = vst.msk [vmem:[#allocation2] sm:$0xff] %vm1366_vm10, %v1364_v13 }
 0x7b3   : > { %v1368_v34 = vld [vmem:[#allocation2] sm:$0xff] }
 0x7b4   : > { %1754 = vmatmul.mubr.msk.bf16.vlgmr.msra.gmra.mrb[28].mxu0 %vm301_vm0, %v1368_v34 }
 0x887   : > { %v1445_v35 = vpop.f32.mrb[28].mxu0 }
 0x888   : > { %v1446_v37 = vadd.f32 %v1599_v7, %v1445_v35  ;;  %v1755_v38 = vpop.f32.mrb[29].mxu0 }
 0x889   : > { %v1448_v20 = vpop.f32.mrb[30].mxu0 }
 0x88a   : > { %1452 = vst.msk [vmem:[%s244_s7] sm:$0xff] %vm301_vm0, %v1446_v37  ;;  %v1449_v22 = vadd.f32 %v1599_v7, %v1448_v20  ;;  %v1756_v40 = vpop.f32.mrb[31].mxu0 }
 0x88c   : > { %1453 = vst.msk [vmem:[%s244_s7 + $0x8] sm:$0xff] %vm301_vm0, %v1449_v22 }
 0x88d   : > { %2027 = shalt.err (!%p2024_p2)
}
 0x88e   : > { %s2028_s12 = scalar_lea.hbm %s2596_s9, 256  ;;  %s2032_s21 = scalar_lea.hbm %s2646_s4, 512 }
 0x88f   : > { %p2029_p13 = scmp.ne.s32.totalorder %s2596_s9, %s2028_s12  ;;  %p2033_p4 = scmp.lt.u32.totalorder %s2596_s9, %s2646_s4 }
 0x890   : > { %p2034_p7 = scmp.lt.u32.totalorder %s2032_s21, %s2028_s12  ;;  %p2036_p8 = scmp.lt.u32.totalorder %s2028_s12, %s2596_s9 }
 0x891   : > { %p2030_p6 = pnand %p2029_p13, %p2660_p0 }
 0x892   : > { %p2035_p11 = por %p2034_p7, %p2033_p4 }
 0x893   : > { %p2031_p10 = pneg %p2030_p6 }
 0x894   : > { %p2037_p1 = por %p2036_p8, %p2035_p11 }
 0x896   : > { %p2038_p3 = pnand %p2037_p1, %p2031_p10 }
 0x898   : > { %2041 = shalt.err (!%p2038_p3)
}
 0x899   : > { %s2112_s30 = smov 128  }
 0x89a   : > { %1767 = dma.vmem_to_hbm [thread:$0]  (%p2660_p0), %s2590_s8, 256, %s2596_s9, %s1455_s19, %s2112_s30, %s2112_s30, %s2110_s24  }
 0x89b PF: > { %s1483_s6 = sand.u32 1, %s2072_s15   ;;  %p2661_p5 = scmp.ne.s32.totalorder %s2651_s22, 0 }
 0x89c   : > { %p2662_p9 = scmp.ge.s32.totalorder %s2084_s18, 2  ;;  %s1484_s25 = scalar_lea.sflag [#allocation5], %s1483_s6 }
 0x89e   : > { %p1781_p12 = pnand %p2662_p9, %p2661_p5 }
 0x8a0   : > { %2067 = dma.done.wait (!%p1781_p12), %s1484_s25, 256  }
 0x8a1   : > { %2069 = vsyncadd (!%p1781_p12), %s1484_s25, 4294967040  ;;  %p18_p2 = scmp.ge.s32.totalorder %s2251_s11, 4   ;;  %s2663_s15 = smov %s2076_s16 }
 0x8a2   : > { %s2664_s16 = smov %s2080_s17  ;;  %s2665_s17 = smov %s2260_s14 }
 0x8a3   : > { %s2666_s18 = smov %s2251_s11  ;;  %20 = sbr.rel (!%p18_p2) target bundleno = 6 (0x6), region = 89 }
 0x8aa   :  { %1489 = vsyncpa [#allocation4], 1 }
 0x8ab   :  { %1491 = vsyncpa [#allocation4 + $0x1], 1 }
 0x8ac   :  { %1492 = vsyncpa [#allocation7], 1 }
 0x8ad   :  { %1493 = vsyncpa [#allocation5], 1 }
 0x8ae   :  { %1495 = vsyncpa [#allocation5 + $0x1], 1 }

</bundles_post_ra>
